<compile_context>
chip_gen: v7x
topology: tpu7x:2x2x1
jax: 0.10.0
libtpu: 0.0.40
codegen_flags: <defaults>
</compile_context>

<pallas_src>
import functools

import numpy as np

import jax
import jax.numpy as jnp
from jax.experimental import pallas as pl
from jax.experimental.pallas import tpu as pltpu


# ---------------------------------------------------------------------------
# One fused Pallas kernel for the whole forward pass (one image per program).
# ---------------------------------------------------------------------------
def _disc_kernel(*refs, cfgs, slope):
    """refs = (x_ref, [lh_ref, r_ref, bias_ref] * n_layers, out_ref).

    x_ref  : (1, H, W*Cin)  image as 2-D matrix Z[h, w*Cin + ci]
    lh_ref : (k, S_out, S_in)        0/1 row gather (stride + padding folded in)
    r_ref  : (k, S_in*Cin, S_out*Cout)  banded conv weights for kernel row kh
    bias_ref: (1, S_out*Cout)
    out_ref: (1, 1, 1)
    """
    x_ref = refs[0]
    out_ref = refs[-1]
    wrefs = refs[1:-1]

    z = x_ref[0]  # (H, W*Cin), float32
    p = 0
    for ksz, apply_act in cfgs:
        lh_ref, r_ref, b_ref = wrefs[p], wrefs[p + 1], wrefs[p + 2]
        p += 3
        acc = None
        for kh in range(ksz):
            a = jnp.dot(lh_ref[kh], z, preferred_element_type=jnp.float32)
            t = jnp.dot(a, r_ref[kh], preferred_element_type=jnp.float32)
            acc = t if acc is None else acc + t
        acc = acc + b_ref[...]
        if apply_act:
            acc = jnp.where(acc > 0, acc, slope * acc)  # LeakyReLU
        z = acc
    out_ref[0] = z  # z is (1, 1)


# ---------------------------------------------------------------------------
# One-time weight transformation (done at init, NOT per forward call).
# ---------------------------------------------------------------------------
def _toeplitz_layer_mats(conv_w, conv_b, s_in, stride, pad):
    """Build (LH, R, bias_row) so that, for one image stored as the 2-D matrix
    Z[h, w*Cin + ci], the conv layer is
        out[i, j*Cout + co] = sum_kh (LH[kh] @ Z @ R[kh])[i, j*Cout+co] + bias.
    Zero padding is folded in (out-of-range rows of LH / bands of R are 0)."""
    conv_w = np.asarray(conv_w, np.float32)   # (Cout, Cin, KH, KW)
    conv_b = np.asarray(conv_b, np.float32)
    c_out, c_in, kh_sz, kw_sz = conv_w.shape
    s_out = (s_in + 2 * pad - kh_sz) // stride + 1

    lh = np.zeros((kh_sz, s_out, s_in), np.float32)
    for kh in range(kh_sz):
        for i in range(s_out):
            h = stride * i - pad + kh
            if 0 <= h < s_in:
                lh[kh, i, h] = 1.0

    r = np.zeros((kh_sz, s_in * c_in, s_out * c_out), np.float32)
    for kh in range(kh_sz):
        for j in range(s_out):
            for kw in range(kw_sz):
                w = stride * j - pad + kw
                if 0 <= w < s_in:
                    # R[w*Cin + ci, j*Cout + co] = W[co, ci, kh, kw]
                    r[kh, w * c_in:(w + 1) * c_in,
                      j * c_out:(j + 1) * c_out] = conv_w[:, :, kh, kw].T

    bias_row = np.tile(conv_b, s_out).reshape(1, s_out * c_out)
    mats = (jnp.asarray(lh), jnp.asarray(r), jnp.asarray(bias_row))
    return mats, s_out


def init_discriminator_params(key, feature_dim=4, in_shape=(1, 32, 32)):
    channels = in_shape[0]
    plan = [
        (channels, feature_dim),
        (feature_dim, 2 * feature_dim),
        (2 * feature_dim, 4 * feature_dim),
        (4 * feature_dim, 8 * feature_dim),
    ]
    convs = []
    for cin, cout in plan:
        key, kw_, kb_ = jax.random.split(key, 3)
        bound = 1.0 / np.sqrt(cin * 16.0)
        w = jax.random.uniform(kw_, (cout, cin, 4, 4), jnp.float32, -bound, bound)
        b = jax.random.uniform(kb_, (cout,), jnp.float32, -bound, bound)
        convs.append((w, b))
    last_size = in_shape[1] * in_shape[2] * 8 * feature_dim // (16 ** 2)
    key, kw_, kb_ = jax.random.split(key, 3)
    bound = 1.0 / np.sqrt(float(last_size))
    fc_w = jax.random.uniform(kw_, (last_size, 1), jnp.float32, -bound, bound)
    fc_b = jax.random.uniform(kb_, (1,), jnp.float32, -bound, bound)
    return {"convs": convs, "fc_w": fc_w, "fc_b": fc_b,
            "last_size": last_size, "in_shape": in_shape}


def prepare_discriminator(params):
    """Pre-transform all weights into the kernel's (LH, R, bias_row) form."""
    _, h, w = params["in_shape"]
    assert h == w, "square inputs expected"
    layers, cfgs = [], []
    s = h
    for conv_w, conv_b in params["convs"]:
        mats, s = _toeplitz_layer_mats(conv_w, conv_b, s, stride=2, pad=1)
        layers.append(mats)
        cfgs.append((int(mats[0].shape[0]), True))    # k=4, LeakyReLU
    # Final nn.Linear over the NCHW-flattened (C, s, s) map == a k=s, stride-1,
    # pad-0 conv with Cout=1  (fc_w index is c*s*s + h*s + w, i.e. NCHW order).
    c_last = params["convs"][-1][0].shape[0]
    fc_as_conv = np.asarray(params["fc_w"], np.float32)[:, 0].reshape(
        c_last, s, s)[None]                            # (1, C, s, s)
    mats, s = _toeplitz_layer_mats(fc_as_conv, params["fc_b"], s, stride=1, pad=0)
    layers.append(mats)
    cfgs.append((int(mats[0].shape[0]), False))        # no activation
    assert s == 1
    return {"layers": layers, "cfgs": tuple(cfgs)}


# ---------------------------------------------------------------------------
# Forward pass: one pallas_call for the entire network.
# ---------------------------------------------------------------------------
def _const_index_map(ndim):
    return lambda b: (0,) * ndim


def discriminator_forward(prep, x, leaky_slope=0.2):
    b, c, h, w = x.shape
    # Single, one-time layout change: NCHW image -> 2-D (H, W*C) per batch.
    x2d = jnp.transpose(x, (0, 2, 3, 1)).reshape(b, h, w * c).astype(jnp.float32)

    flat_inputs = [x2d]
    in_specs = [pl.BlockSpec((1, h, w * c), lambda i: (i, 0, 0))]
    for lh, r, br in prep["layers"]:
        for arr in (lh, r, br):
            flat_inputs.append(arr)
            in_specs.append(pl.BlockSpec(arr.shape, _const_index_map(arr.ndim)))

    kernel = functools.partial(_disc_kernel, cfgs=prep["cfgs"], slope=leaky_slope)
    out = pl.pallas_call(
        kernel,
        out_shape=jax.ShapeDtypeStruct((b, 1, 1), jnp.float32),
        grid=(b,),
        in_specs=in_specs,
        out_specs=pl.BlockSpec((1, 1, 1), lambda i: (i, 0, 0)),
        compiler_params=pltpu.CompilerParams(
            dimension_semantics=("parallel",)),   # v7x: batch across both TCs
    )(*flat_inputs)
    return out.reshape(b, 1)


# ---------------------------------------------------------------------------
# Pure-JAX reference (XLA conv) used only for the correctness check.
# ---------------------------------------------------------------------------
def _reference_forward(params, x, leaky_slope=0.2):
    for w, b in params["convs"]:
        x = jax.lax.conv_general_dilated(
            x, w, window_strides=(2, 2), padding=((1, 1), (1, 1)),
            dimension_numbers=("NCHW", "OIHW", "NCHW"))
        x = x + b.reshape(1, -1, 1, 1)
        x = jnp.where(x > 0, x, leaky_slope * x)
    bsz = x.shape[0]
    x = x.reshape(bsz, params["last_size"])
    return x @ params["fc_w"] + params["fc_b"]


if __name__ == "__main__":
    key = jax.random.PRNGKey(0)
    k_params, k_x = jax.random.split(key)

    feature_dim = 4
    in_shape = (1, 32, 32)
    batch = 2

    params = init_discriminator_params(k_params, feature_dim, in_shape)
    prep = prepare_discriminator(params)        # one-time weight transform
    x = jax.random.normal(k_x, (batch,) + in_shape, dtype=jnp.float32)

    fwd = jax.jit(functools.partial(discriminator_forward, prep))
    out = jax.block_until_ready(fwd(x))

    ref = jax.block_until_ready(_reference_forward(params, x))
    assert out.shape == (batch, 1), out.shape
    assert jnp.allclose(out, ref, rtol=1e-2, atol=1e-2), (out, ref)

    # TODO(synk): training helpers (_train, _calc_gradient_penalty) use
    # autograd/optimizers and are out of scope for a forward-pass kernel.
    print("KERNEL_OK")
</pallas_src>

<mosaic_0001>
module attributes {stable_mosaic.version = 11 : i64} {
  func.func @_disc_kernel(%arg0: i32, %arg1: memref<1x32x32xf32, #tpu.memory_space<vmem>>, %arg2: memref<4x16x32xf32, #tpu.memory_space<vmem>>, %arg3: memref<4x32x64xf32, #tpu.memory_space<vmem>>, %arg4: memref<1x64xf32, #tpu.memory_space<vmem>>, %arg5: memref<4x8x16xf32, #tpu.memory_space<vmem>>, %arg6: memref<4x64x64xf32, #tpu.memory_space<vmem>>, %arg7: memref<1x64xf32, #tpu.memory_space<vmem>>, %arg8: memref<4x4x8xf32, #tpu.memory_space<vmem>>, %arg9: memref<4x64x64xf32, #tpu.memory_space<vmem>>, %arg10: memref<1x64xf32, #tpu.memory_space<vmem>>, %arg11: memref<4x2x4xf32, #tpu.memory_space<vmem>>, %arg12: memref<4x64x64xf32, #tpu.memory_space<vmem>>, %arg13: memref<1x64xf32, #tpu.memory_space<vmem>>, %arg14: memref<2x1x2xf32, #tpu.memory_space<vmem>>, %arg15: memref<2x64x1xf32, #tpu.memory_space<vmem>>, %arg16: memref<1x1xf32, #tpu.memory_space<vmem>>, %arg17: memref<1x1x1xf32, #tpu.memory_space<vmem>>) attributes {dimension_semantics = [#tpu.dimension_semantics<parallel>], iteration_bounds = array<i64: 2>, scalar_prefetch = 0 : i64, scratch_operands = 0 : i64, tpu.core_type = #tpu.core_type<tc>, window_params = [{transform_indices = @transform_0, window_bounds = array<i64: 1, 32, 32>}, {pipeline_mode = #tpu.pipeline_mode<synchronous>, transform_indices = @transform_1, window_bounds = array<i64: 4, 16, 32>}, {pipeline_mode = #tpu.pipeline_mode<synchronous>, transform_indices = @transform_2, window_bounds = array<i64: 4, 32, 64>}, {pipeline_mode = #tpu.pipeline_mode<synchronous>, transform_indices = @transform_3, window_bounds = array<i64: 1, 64>}, {pipeline_mode = #tpu.pipeline_mode<synchronous>, transform_indices = @transform_4, window_bounds = array<i64: 4, 8, 16>}, {pipeline_mode = #tpu.pipeline_mode<synchronous>, transform_indices = @transform_5, window_bounds = array<i64: 4, 64, 64>}, {pipeline_mode = #tpu.pipeline_mode<synchronous>, transform_indices = @transform_6, window_bounds = array<i64: 1, 64>}, {pipeline_mode = #tpu.pipeline_mode<synchronous>, transform_indices = @transform_7, window_bounds = array<i64: 4, 4, 8>}, {pipeline_mode = #tpu.pipeline_mode<synchronous>, transform_indices = @transform_8, window_bounds = array<i64: 4, 64, 64>}, {pipeline_mode = #tpu.pipeline_mode<synchronous>, transform_indices = @transform_9, window_bounds = array<i64: 1, 64>}, {pipeline_mode = #tpu.pipeline_mode<synchronous>, transform_indices = @transform_10, window_bounds = array<i64: 4, 2, 4>}, {pipeline_mode = #tpu.pipeline_mode<synchronous>, transform_indices = @transform_11, window_bounds = array<i64: 4, 64, 64>}, {pipeline_mode = #tpu.pipeline_mode<synchronous>, transform_indices = @transform_12, window_bounds = array<i64: 1, 64>}, {pipeline_mode = #tpu.pipeline_mode<synchronous>, transform_indices = @transform_13, window_bounds = array<i64: 2, 1, 2>}, {pipeline_mode = #tpu.pipeline_mode<synchronous>, transform_indices = @transform_14, window_bounds = array<i64: 2, 64, 1>}, {pipeline_mode = #tpu.pipeline_mode<synchronous>, transform_indices = @transform_15, window_bounds = array<i64: 1, 1>}, {transform_indices = @transform_16, window_bounds = array<i64: 1, 1, 1>}]} {
    %c0 = arith.constant 0 : index
    %c0_0 = arith.constant 0 : index
    %c0_1 = arith.constant 0 : index
    %0 = vector.load %arg1[%c0, %c0_0, %c0_1] : memref<1x32x32xf32, #tpu.memory_space<vmem>>, vector<1x32x32xf32>
    %1 = vector.shape_cast %0 : vector<1x32x32xf32> to vector<32x32xf32>
    %c0_2 = arith.constant 0 : index
    %c0_3 = arith.constant 0 : index
    %c0_4 = arith.constant 0 : index
    %2 = vector.load %arg2[%c0_2, %c0_3, %c0_4] : memref<4x16x32xf32, #tpu.memory_space<vmem>>, vector<1x16x32xf32>
    %3 = vector.shape_cast %2 : vector<1x16x32xf32> to vector<16x32xf32>
    %cst = arith.constant dense<0.000000e+00> : vector<16x32xf32>
    %4 = tpu.matmul %3, %1, %cst {dimension_numbers = #tpu.dot_dimension_numbers<[1], [0], [0], [1], [0, 0, 1, 1], [], []>} : vector<16x32xf32>, vector<32x32xf32>, vector<16x32xf32> -> vector<16x32xf32>
    %c0_5 = arith.constant 0 : index
    %c0_6 = arith.constant 0 : index
    %c0_7 = arith.constant 0 : index
    %5 = vector.load %arg3[%c0_5, %c0_6, %c0_7] : memref<4x32x64xf32, #tpu.memory_space<vmem>>, vector<1x32x64xf32>
    %6 = vector.shape_cast %5 : vector<1x32x64xf32> to vector<32x64xf32>
    %cst_8 = arith.constant dense<0.000000e+00> : vector<16x64xf32>
    %7 = tpu.matmul %4, %6, %cst_8 {dimension_numbers = #tpu.dot_dimension_numbers<[1], [0], [0], [1], [0, 0, 1, 1], [], []>} : vector<16x32xf32>, vector<32x64xf32>, vector<16x64xf32> -> vector<16x64xf32>
    %c1 = arith.constant 1 : index
    %c0_9 = arith.constant 0 : index
    %c0_10 = arith.constant 0 : index
    %8 = vector.load %arg2[%c1, %c0_9, %c0_10] : memref<4x16x32xf32, #tpu.memory_space<vmem>>, vector<1x16x32xf32>
    %9 = vector.shape_cast %8 : vector<1x16x32xf32> to vector<16x32xf32>
    %cst_11 = arith.constant dense<0.000000e+00> : vector<16x32xf32>
    %10 = tpu.matmul %9, %1, %cst_11 {dimension_numbers = #tpu.dot_dimension_numbers<[1], [0], [0], [1], [0, 0, 1, 1], [], []>} : vector<16x32xf32>, vector<32x32xf32>, vector<16x32xf32> -> vector<16x32xf32>
    %c1_12 = arith.constant 1 : index
    %c0_13 = arith.constant 0 : index
    %c0_14 = arith.constant 0 : index
    %11 = vector.load %arg3[%c1_12, %c0_13, %c0_14] : memref<4x32x64xf32, #tpu.memory_space<vmem>>, vector<1x32x64xf32>
    %12 = vector.shape_cast %11 : vector<1x32x64xf32> to vector<32x64xf32>
    %cst_15 = arith.constant dense<0.000000e+00> : vector<16x64xf32>
    %13 = tpu.matmul %10, %12, %cst_15 {dimension_numbers = #tpu.dot_dimension_numbers<[1], [0], [0], [1], [0, 0, 1, 1], [], []>} : vector<16x32xf32>, vector<32x64xf32>, vector<16x64xf32> -> vector<16x64xf32>
    %14 = arith.addf %7, %13 : vector<16x64xf32>
    %c2 = arith.constant 2 : index
    %c0_16 = arith.constant 0 : index
    %c0_17 = arith.constant 0 : index
    %15 = vector.load %arg2[%c2, %c0_16, %c0_17] : memref<4x16x32xf32, #tpu.memory_space<vmem>>, vector<1x16x32xf32>
    %16 = vector.shape_cast %15 : vector<1x16x32xf32> to vector<16x32xf32>
    %cst_18 = arith.constant dense<0.000000e+00> : vector<16x32xf32>
    %17 = tpu.matmul %16, %1, %cst_18 {dimension_numbers = #tpu.dot_dimension_numbers<[1], [0], [0], [1], [0, 0, 1, 1], [], []>} : vector<16x32xf32>, vector<32x32xf32>, vector<16x32xf32> -> vector<16x32xf32>
    %c2_19 = arith.constant 2 : index
    %c0_20 = arith.constant 0 : index
    %c0_21 = arith.constant 0 : index
    %18 = vector.load %arg3[%c2_19, %c0_20, %c0_21] : memref<4x32x64xf32, #tpu.memory_space<vmem>>, vector<1x32x64xf32>
    %19 = vector.shape_cast %18 : vector<1x32x64xf32> to vector<32x64xf32>
    %cst_22 = arith.constant dense<0.000000e+00> : vector<16x64xf32>
    %20 = tpu.matmul %17, %19, %cst_22 {dimension_numbers = #tpu.dot_dimension_numbers<[1], [0], [0], [1], [0, 0, 1, 1], [], []>} : vector<16x32xf32>, vector<32x64xf32>, vector<16x64xf32> -> vector<16x64xf32>
    %21 = arith.addf %14, %20 : vector<16x64xf32>
    %c3 = arith.constant 3 : index
    %c0_23 = arith.constant 0 : index
    %c0_24 = arith.constant 0 : index
    %22 = vector.load %arg2[%c3, %c0_23, %c0_24] : memref<4x16x32xf32, #tpu.memory_space<vmem>>, vector<1x16x32xf32>
    %23 = vector.shape_cast %22 : vector<1x16x32xf32> to vector<16x32xf32>
    %cst_25 = arith.constant dense<0.000000e+00> : vector<16x32xf32>
    %24 = tpu.matmul %23, %1, %cst_25 {dimension_numbers = #tpu.dot_dimension_numbers<[1], [0], [0], [1], [0, 0, 1, 1], [], []>} : vector<16x32xf32>, vector<32x32xf32>, vector<16x32xf32> -> vector<16x32xf32>
    %c3_26 = arith.constant 3 : index
    %c0_27 = arith.constant 0 : index
    %c0_28 = arith.constant 0 : index
    %25 = vector.load %arg3[%c3_26, %c0_27, %c0_28] : memref<4x32x64xf32, #tpu.memory_space<vmem>>, vector<1x32x64xf32>
    %26 = vector.shape_cast %25 : vector<1x32x64xf32> to vector<32x64xf32>
    %cst_29 = arith.constant dense<0.000000e+00> : vector<16x64xf32>
    %27 = tpu.matmul %24, %26, %cst_29 {dimension_numbers = #tpu.dot_dimension_numbers<[1], [0], [0], [1], [0, 0, 1, 1], [], []>} : vector<16x32xf32>, vector<32x64xf32>, vector<16x64xf32> -> vector<16x64xf32>
    %28 = arith.addf %21, %27 : vector<16x64xf32>
    %c0_30 = arith.constant 0 : index
    %c0_31 = arith.constant 0 : index
    %29 = vector.load %arg4[%c0_30, %c0_31] : memref<1x64xf32, #tpu.memory_space<vmem>>, vector<1x64xf32>
    %30 = vector.broadcast %29 : vector<1x64xf32> to vector<16x64xf32>
    %31 = arith.addf %28, %30 : vector<16x64xf32>
    %cst_32 = arith.constant 0.000000e+00 : f32
    %32 = vector.broadcast %cst_32 : f32 to vector<16x64xf32>
    %33 = arith.cmpf ogt, %31, %32 : vector<16x64xf32>
    %cst_33 = arith.constant 2.000000e-01 : f32
    %34 = vector.broadcast %cst_33 : f32 to vector<16x64xf32>
    %35 = arith.mulf %34, %31 : vector<16x64xf32>
    %36 = arith.select %33, %31, %35 : vector<16x64xi1>, vector<16x64xf32>
    %c0_34 = arith.constant 0 : index
    %c0_35 = arith.constant 0 : index
    %c0_36 = arith.constant 0 : index
    %37 = vector.load %arg5[%c0_34, %c0_35, %c0_36] : memref<4x8x16xf32, #tpu.memory_space<vmem>>, vector<1x8x16xf32>
    %38 = vector.shape_cast %37 : vector<1x8x16xf32> to vector<8x16xf32>
    %cst_37 = arith.constant dense<0.000000e+00> : vector<8x64xf32>
    %39 = tpu.matmul %38, %36, %cst_37 {dimension_numbers = #tpu.dot_dimension_numbers<[1], [0], [0], [1], [0, 0, 1, 1], [], []>} : vector<8x16xf32>, vector<16x64xf32>, vector<8x64xf32> -> vector<8x64xf32>
    %c0_38 = arith.constant 0 : index
    %c0_39 = arith.constant 0 : index
    %c0_40 = arith.constant 0 : index
    %40 = vector.load %arg6[%c0_38, %c0_39, %c0_40] : memref<4x64x64xf32, #tpu.memory_space<vmem>>, vector<1x64x64xf32>
    %41 = vector.shape_cast %40 : vector<1x64x64xf32> to vector<64x64xf32>
    %cst_41 = arith.constant dense<0.000000e+00> : vector<8x64xf32>
    %42 = tpu.matmul %39, %41, %cst_41 {dimension_numbers = #tpu.dot_dimension_numbers<[1], [0], [0], [1], [0, 0, 1, 1], [], []>} : vector<8x64xf32>, vector<64x64xf32>, vector<8x64xf32> -> vector<8x64xf32>
    %c1_42 = arith.constant 1 : index
    %c0_43 = arith.constant 0 : index
    %c0_44 = arith.constant 0 : index
    %43 = vector.load %arg5[%c1_42, %c0_43, %c0_44] : memref<4x8x16xf32, #tpu.memory_space<vmem>>, vector<1x8x16xf32>
    %44 = vector.shape_cast %43 : vector<1x8x16xf32> to vector<8x16xf32>
    %cst_45 = arith.constant dense<0.000000e+00> : vector<8x64xf32>
    %45 = tpu.matmul %44, %36, %cst_45 {dimension_numbers = #tpu.dot_dimension_numbers<[1], [0], [0], [1], [0, 0, 1, 1], [], []>} : vector<8x16xf32>, vector<16x64xf32>, vector<8x64xf32> -> vector<8x64xf32>
    %c1_46 = arith.constant 1 : index
    %c0_47 = arith.constant 0 : index
    %c0_48 = arith.constant 0 : index
    %46 = vector.load %arg6[%c1_46, %c0_47, %c0_48] : memref<4x64x64xf32, #tpu.memory_space<vmem>>, vector<1x64x64xf32>
    %47 = vector.shape_cast %46 : vector<1x64x64xf32> to vector<64x64xf32>
    %cst_49 = arith.constant dense<0.000000e+00> : vector<8x64xf32>
    %48 = tpu.matmul %45, %47, %cst_49 {dimension_numbers = #tpu.dot_dimension_numbers<[1], [0], [0], [1], [0, 0, 1, 1], [], []>} : vector<8x64xf32>, vector<64x64xf32>, vector<8x64xf32> -> vector<8x64xf32>
    %49 = arith.addf %42, %48 : vector<8x64xf32>
    %c2_50 = arith.constant 2 : index
    %c0_51 = arith.constant 0 : index
    %c0_52 = arith.constant 0 : index
    %50 = vector.load %arg5[%c2_50, %c0_51, %c0_52] : memref<4x8x16xf32, #tpu.memory_space<vmem>>, vector<1x8x16xf32>
    %51 = vector.shape_cast %50 : vector<1x8x16xf32> to vector<8x16xf32>
    %cst_53 = arith.constant dense<0.000000e+00> : vector<8x64xf32>
    %52 = tpu.matmul %51, %36, %cst_53 {dimension_numbers = #tpu.dot_dimension_numbers<[1], [0], [0], [1], [0, 0, 1, 1], [], []>} : vector<8x16xf32>, vector<16x64xf32>, vector<8x64xf32> -> vector<8x64xf32>
    %c2_54 = arith.constant 2 : index
    %c0_55 = arith.constant 0 : index
    %c0_56 = arith.constant 0 : index
    %53 = vector.load %arg6[%c2_54, %c0_55, %c0_56] : memref<4x64x64xf32, #tpu.memory_space<vmem>>, vector<1x64x64xf32>
    %54 = vector.shape_cast %53 : vector<1x64x64xf32> to vector<64x64xf32>
    %cst_57 = arith.constant dense<0.000000e+00> : vector<8x64xf32>
    %55 = tpu.matmul %52, %54, %cst_57 {dimension_numbers = #tpu.dot_dimension_numbers<[1], [0], [0], [1], [0, 0, 1, 1], [], []>} : vector<8x64xf32>, vector<64x64xf32>, vector<8x64xf32> -> vector<8x64xf32>
    %56 = arith.addf %49, %55 : vector<8x64xf32>
    %c3_58 = arith.constant 3 : index
    %c0_59 = arith.constant 0 : index
    %c0_60 = arith.constant 0 : index
    %57 = vector.load %arg5[%c3_58, %c0_59, %c0_60] : memref<4x8x16xf32, #tpu.memory_space<vmem>>, vector<1x8x16xf32>
    %58 = vector.shape_cast %57 : vector<1x8x16xf32> to vector<8x16xf32>
    %cst_61 = arith.constant dense<0.000000e+00> : vector<8x64xf32>
    %59 = tpu.matmul %58, %36, %cst_61 {dimension_numbers = #tpu.dot_dimension_numbers<[1], [0], [0], [1], [0, 0, 1, 1], [], []>} : vector<8x16xf32>, vector<16x64xf32>, vector<8x64xf32> -> vector<8x64xf32>
    %c3_62 = arith.constant 3 : index
    %c0_63 = arith.constant 0 : index
    %c0_64 = arith.constant 0 : index
    %60 = vector.load %arg6[%c3_62, %c0_63, %c0_64] : memref<4x64x64xf32, #tpu.memory_space<vmem>>, vector<1x64x64xf32>
    %61 = vector.shape_cast %60 : vector<1x64x64xf32> to vector<64x64xf32>
    %cst_65 = arith.constant dense<0.000000e+00> : vector<8x64xf32>
    %62 = tpu.matmul %59, %61, %cst_65 {dimension_numbers = #tpu.dot_dimension_numbers<[1], [0], [0], [1], [0, 0, 1, 1], [], []>} : vector<8x64xf32>, vector<64x64xf32>, vector<8x64xf32> -> vector<8x64xf32>
    %63 = arith.addf %56, %62 : vector<8x64xf32>
    %c0_66 = arith.constant 0 : index
    %c0_67 = arith.constant 0 : index
    %64 = vector.load %arg7[%c0_66, %c0_67] : memref<1x64xf32, #tpu.memory_space<vmem>>, vector<1x64xf32>
    %65 = vector.broadcast %64 : vector<1x64xf32> to vector<8x64xf32>
    %66 = arith.addf %63, %65 : vector<8x64xf32>
    %cst_68 = arith.constant 0.000000e+00 : f32
    %67 = vector.broadcast %cst_68 : f32 to vector<8x64xf32>
    %68 = arith.cmpf ogt, %66, %67 : vector<8x64xf32>
    %cst_69 = arith.constant 2.000000e-01 : f32
    %69 = vector.broadcast %cst_69 : f32 to vector<8x64xf32>
    %70 = arith.mulf %69, %66 : vector<8x64xf32>
    %71 = arith.select %68, %66, %70 : vector<8x64xi1>, vector<8x64xf32>
    %c0_70 = arith.constant 0 : index
    %c0_71 = arith.constant 0 : index
    %c0_72 = arith.constant 0 : index
    %72 = vector.load %arg8[%c0_70, %c0_71, %c0_72] : memref<4x4x8xf32, #tpu.memory_space<vmem>>, vector<1x4x8xf32>
    %73 = vector.shape_cast %72 : vector<1x4x8xf32> to vector<4x8xf32>
    %cst_73 = arith.constant dense<0.000000e+00> : vector<4x64xf32>
    %74 = tpu.matmul %73, %71, %cst_73 {dimension_numbers = #tpu.dot_dimension_numbers<[1], [0], [0], [1], [0, 0, 1, 1], [], []>} : vector<4x8xf32>, vector<8x64xf32>, vector<4x64xf32> -> vector<4x64xf32>
    %c0_74 = arith.constant 0 : index
    %c0_75 = arith.constant 0 : index
    %c0_76 = arith.constant 0 : index
    %75 = vector.load %arg9[%c0_74, %c0_75, %c0_76] : memref<4x64x64xf32, #tpu.memory_space<vmem>>, vector<1x64x64xf32>
    %76 = vector.shape_cast %75 : vector<1x64x64xf32> to vector<64x64xf32>
    %cst_77 = arith.constant dense<0.000000e+00> : vector<4x64xf32>
    %77 = tpu.matmul %74, %76, %cst_77 {dimension_numbers = #tpu.dot_dimension_numbers<[1], [0], [0], [1], [0, 0, 1, 1], [], []>} : vector<4x64xf32>, vector<64x64xf32>, vector<4x64xf32> -> vector<4x64xf32>
    %c1_78 = arith.constant 1 : index
    %c0_79 = arith.constant 0 : index
    %c0_80 = arith.constant 0 : index
    %78 = vector.load %arg8[%c1_78, %c0_79, %c0_80] : memref<4x4x8xf32, #tpu.memory_space<vmem>>, vector<1x4x8xf32>
    %79 = vector.shape_cast %78 : vector<1x4x8xf32> to vector<4x8xf32>
    %cst_81 = arith.constant dense<0.000000e+00> : vector<4x64xf32>
    %80 = tpu.matmul %79, %71, %cst_81 {dimension_numbers = #tpu.dot_dimension_numbers<[1], [0], [0], [1], [0, 0, 1, 1], [], []>} : vector<4x8xf32>, vector<8x64xf32>, vector<4x64xf32> -> vector<4x64xf32>
    %c1_82 = arith.constant 1 : index
    %c0_83 = arith.constant 0 : index
    %c0_84 = arith.constant 0 : index
    %81 = vector.load %arg9[%c1_82, %c0_83, %c0_84] : memref<4x64x64xf32, #tpu.memory_space<vmem>>, vector<1x64x64xf32>
    %82 = vector.shape_cast %81 : vector<1x64x64xf32> to vector<64x64xf32>
    %cst_85 = arith.constant dense<0.000000e+00> : vector<4x64xf32>
    %83 = tpu.matmul %80, %82, %cst_85 {dimension_numbers = #tpu.dot_dimension_numbers<[1], [0], [0], [1], [0, 0, 1, 1], [], []>} : vector<4x64xf32>, vector<64x64xf32>, vector<4x64xf32> -> vector<4x64xf32>
    %84 = arith.addf %77, %83 : vector<4x64xf32>
    %c2_86 = arith.constant 2 : index
    %c0_87 = arith.constant 0 : index
    %c0_88 = arith.constant 0 : index
    %85 = vector.load %arg8[%c2_86, %c0_87, %c0_88] : memref<4x4x8xf32, #tpu.memory_space<vmem>>, vector<1x4x8xf32>
    %86 = vector.shape_cast %85 : vector<1x4x8xf32> to vector<4x8xf32>
    %cst_89 = arith.constant dense<0.000000e+00> : vector<4x64xf32>
    %87 = tpu.matmul %86, %71, %cst_89 {dimension_numbers = #tpu.dot_dimension_numbers<[1], [0], [0], [1], [0, 0, 1, 1], [], []>} : vector<4x8xf32>, vector<8x64xf32>, vector<4x64xf32> -> vector<4x64xf32>
    %c2_90 = arith.constant 2 : index
    %c0_91 = arith.constant 0 : index
    %c0_92 = arith.constant 0 : index
    %88 = vector.load %arg9[%c2_90, %c0_91, %c0_92] : memref<4x64x64xf32, #tpu.memory_space<vmem>>, vector<1x64x64xf32>
    %89 = vector.shape_cast %88 : vector<1x64x64xf32> to vector<64x64xf32>
    %cst_93 = arith.constant dense<0.000000e+00> : vector<4x64xf32>
    %90 = tpu.matmul %87, %89, %cst_93 {dimension_numbers = #tpu.dot_dimension_numbers<[1], [0], [0], [1], [0, 0, 1, 1], [], []>} : vector<4x64xf32>, vector<64x64xf32>, vector<4x64xf32> -> vector<4x64xf32>
    %91 = arith.addf %84, %90 : vector<4x64xf32>
    %c3_94 = arith.constant 3 : index
    %c0_95 = arith.constant 0 : index
    %c0_96 = arith.constant 0 : index
    %92 = vector.load %arg8[%c3_94, %c0_95, %c0_96] : memref<4x4x8xf32, #tpu.memory_space<vmem>>, vector<1x4x8xf32>
    %93 = vector.shape_cast %92 : vector<1x4x8xf32> to vector<4x8xf32>
    %cst_97 = arith.constant dense<0.000000e+00> : vector<4x64xf32>
    %94 = tpu.matmul %93, %71, %cst_97 {dimension_numbers = #tpu.dot_dimension_numbers<[1], [0], [0], [1], [0, 0, 1, 1], [], []>} : vector<4x8xf32>, vector<8x64xf32>, vector<4x64xf32> -> vector<4x64xf32>
    %c3_98 = arith.constant 3 : index
    %c0_99 = arith.constant 0 : index
    %c0_100 = arith.constant 0 : index
    %95 = vector.load %arg9[%c3_98, %c0_99, %c0_100] : memref<4x64x64xf32, #tpu.memory_space<vmem>>, vector<1x64x64xf32>
    %96 = vector.shape_cast %95 : vector<1x64x64xf32> to vector<64x64xf32>
    %cst_101 = arith.constant dense<0.000000e+00> : vector<4x64xf32>
    %97 = tpu.matmul %94, %96, %cst_101 {dimension_numbers = #tpu.dot_dimension_numbers<[1], [0], [0], [1], [0, 0, 1, 1], [], []>} : vector<4x64xf32>, vector<64x64xf32>, vector<4x64xf32> -> vector<4x64xf32>
    %98 = arith.addf %91, %97 : vector<4x64xf32>
    %c0_102 = arith.constant 0 : index
    %c0_103 = arith.constant 0 : index
    %99 = vector.load %arg10[%c0_102, %c0_103] : memref<1x64xf32, #tpu.memory_space<vmem>>, vector<1x64xf32>
    %100 = vector.broadcast %99 : vector<1x64xf32> to vector<4x64xf32>
    %101 = arith.addf %98, %100 : vector<4x64xf32>
    %cst_104 = arith.constant 0.000000e+00 : f32
    %102 = vector.broadcast %cst_104 : f32 to vector<4x64xf32>
    %103 = arith.cmpf ogt, %101, %102 : vector<4x64xf32>
    %cst_105 = arith.constant 2.000000e-01 : f32
    %104 = vector.broadcast %cst_105 : f32 to vector<4x64xf32>
    %105 = arith.mulf %104, %101 : vector<4x64xf32>
    %106 = arith.select %103, %101, %105 : vector<4x64xi1>, vector<4x64xf32>
    %c0_106 = arith.constant 0 : index
    %c0_107 = arith.constant 0 : index
    %c0_108 = arith.constant 0 : index
    %107 = vector.load %arg11[%c0_106, %c0_107, %c0_108] : memref<4x2x4xf32, #tpu.memory_space<vmem>>, vector<1x2x4xf32>
    %108 = vector.shape_cast %107 : vector<1x2x4xf32> to vector<2x4xf32>
    %cst_109 = arith.constant dense<0.000000e+00> : vector<2x64xf32>
    %109 = tpu.matmul %108, %106, %cst_109 {dimension_numbers = #tpu.dot_dimension_numbers<[1], [0], [0], [1], [0, 0, 1, 1], [], []>} : vector<2x4xf32>, vector<4x64xf32>, vector<2x64xf32> -> vector<2x64xf32>
    %c0_110 = arith.constant 0 : index
    %c0_111 = arith.constant 0 : index
    %c0_112 = arith.constant 0 : index
    %110 = vector.load %arg12[%c0_110, %c0_111, %c0_112] : memref<4x64x64xf32, #tpu.memory_space<vmem>>, vector<1x64x64xf32>
    %111 = vector.shape_cast %110 : vector<1x64x64xf32> to vector<64x64xf32>
    %cst_113 = arith.constant dense<0.000000e+00> : vector<2x64xf32>
    %112 = tpu.matmul %109, %111, %cst_113 {dimension_numbers = #tpu.dot_dimension_numbers<[1], [0], [0], [1], [0, 0, 1, 1], [], []>} : vector<2x64xf32>, vector<64x64xf32>, vector<2x64xf32> -> vector<2x64xf32>
    %c1_114 = arith.constant 1 : index
    %c0_115 = arith.constant 0 : index
    %c0_116 = arith.constant 0 : index
    %113 = vector.load %arg11[%c1_114, %c0_115, %c0_116] : memref<4x2x4xf32, #tpu.memory_space<vmem>>, vector<1x2x4xf32>
    %114 = vector.shape_cast %113 : vector<1x2x4xf32> to vector<2x4xf32>
    %cst_117 = arith.constant dense<0.000000e+00> : vector<2x64xf32>
    %115 = tpu.matmul %114, %106, %cst_117 {dimension_numbers = #tpu.dot_dimension_numbers<[1], [0], [0], [1], [0, 0, 1, 1], [], []>} : vector<2x4xf32>, vector<4x64xf32>, vector<2x64xf32> -> vector<2x64xf32>
    %c1_118 = arith.constant 1 : index
    %c0_119 = arith.constant 0 : index
    %c0_120 = arith.constant 0 : index
    %116 = vector.load %arg12[%c1_118, %c0_119, %c0_120] : memref<4x64x64xf32, #tpu.memory_space<vmem>>, vector<1x64x64xf32>
    %117 = vector.shape_cast %116 : vector<1x64x64xf32> to vector<64x64xf32>
    %cst_121 = arith.constant dense<0.000000e+00> : vector<2x64xf32>
    %118 = tpu.matmul %115, %117, %cst_121 {dimension_numbers = #tpu.dot_dimension_numbers<[1], [0], [0], [1], [0, 0, 1, 1], [], []>} : vector<2x64xf32>, vector<64x64xf32>, vector<2x64xf32> -> vector<2x64xf32>
    %119 = arith.addf %112, %118 : vector<2x64xf32>
    %c2_122 = arith.constant 2 : index
    %c0_123 = arith.constant 0 : index
    %c0_124 = arith.constant 0 : index
    %120 = vector.load %arg11[%c2_122, %c0_123, %c0_124] : memref<4x2x4xf32, #tpu.memory_space<vmem>>, vector<1x2x4xf32>
    %121 = vector.shape_cast %120 : vector<1x2x4xf32> to vector<2x4xf32>
    %cst_125 = arith.constant dense<0.000000e+00> : vector<2x64xf32>
    %122 = tpu.matmul %121, %106, %cst_125 {dimension_numbers = #tpu.dot_dimension_numbers<[1], [0], [0], [1], [0, 0, 1, 1], [], []>} : vector<2x4xf32>, vector<4x64xf32>, vector<2x64xf32> -> vector<2x64xf32>
    %c2_126 = arith.constant 2 : index
    %c0_127 = arith.constant 0 : index
    %c0_128 = arith.constant 0 : index
    %123 = vector.load %arg12[%c2_126, %c0_127, %c0_128] : memref<4x64x64xf32, #tpu.memory_space<vmem>>, vector<1x64x64xf32>
    %124 = vector.shape_cast %123 : vector<1x64x64xf32> to vector<64x64xf32>
    %cst_129 = arith.constant dense<0.000000e+00> : vector<2x64xf32>
    %125 = tpu.matmul %122, %124, %cst_129 {dimension_numbers = #tpu.dot_dimension_numbers<[1], [0], [0], [1], [0, 0, 1, 1], [], []>} : vector<2x64xf32>, vector<64x64xf32>, vector<2x64xf32> -> vector<2x64xf32>
    %126 = arith.addf %119, %125 : vector<2x64xf32>
    %c3_130 = arith.constant 3 : index
    %c0_131 = arith.constant 0 : index
    %c0_132 = arith.constant 0 : index
    %127 = vector.load %arg11[%c3_130, %c0_131, %c0_132] : memref<4x2x4xf32, #tpu.memory_space<vmem>>, vector<1x2x4xf32>
    %128 = vector.shape_cast %127 : vector<1x2x4xf32> to vector<2x4xf32>
    %cst_133 = arith.constant dense<0.000000e+00> : vector<2x64xf32>
    %129 = tpu.matmul %128, %106, %cst_133 {dimension_numbers = #tpu.dot_dimension_numbers<[1], [0], [0], [1], [0, 0, 1, 1], [], []>} : vector<2x4xf32>, vector<4x64xf32>, vector<2x64xf32> -> vector<2x64xf32>
    %c3_134 = arith.constant 3 : index
    %c0_135 = arith.constant 0 : index
    %c0_136 = arith.constant 0 : index
    %130 = vector.load %arg12[%c3_134, %c0_135, %c0_136] : memref<4x64x64xf32, #tpu.memory_space<vmem>>, vector<1x64x64xf32>
    %131 = vector.shape_cast %130 : vector<1x64x64xf32> to vector<64x64xf32>
    %cst_137 = arith.constant dense<0.000000e+00> : vector<2x64xf32>
    %132 = tpu.matmul %129, %131, %cst_137 {dimension_numbers = #tpu.dot_dimension_numbers<[1], [0], [0], [1], [0, 0, 1, 1], [], []>} : vector<2x64xf32>, vector<64x64xf32>, vector<2x64xf32> -> vector<2x64xf32>
    %133 = arith.addf %126, %132 : vector<2x64xf32>
    %c0_138 = arith.constant 0 : index
    %c0_139 = arith.constant 0 : index
    %134 = vector.load %arg13[%c0_138, %c0_139] : memref<1x64xf32, #tpu.memory_space<vmem>>, vector<1x64xf32>
    %135 = vector.broadcast %134 : vector<1x64xf32> to vector<2x64xf32>
    %136 = arith.addf %133, %135 : vector<2x64xf32>
    %cst_140 = arith.constant 0.000000e+00 : f32
    %137 = vector.broadcast %cst_140 : f32 to vector<2x64xf32>
    %138 = arith.cmpf ogt, %136, %137 : vector<2x64xf32>
    %cst_141 = arith.constant 2.000000e-01 : f32
    %139 = vector.broadcast %cst_141 : f32 to vector<2x64xf32>
    %140 = arith.mulf %139, %136 : vector<2x64xf32>
    %141 = arith.select %138, %136, %140 : vector<2x64xi1>, vector<2x64xf32>
    %c0_142 = arith.constant 0 : index
    %c0_143 = arith.constant 0 : index
    %c0_144 = arith.constant 0 : index
    %142 = vector.load %arg14[%c0_142, %c0_143, %c0_144] : memref<2x1x2xf32, #tpu.memory_space<vmem>>, vector<1x1x2xf32>
    %143 = vector.shape_cast %142 : vector<1x1x2xf32> to vector<1x2xf32>
    %cst_145 = arith.constant dense<0.000000e+00> : vector<1x64xf32>
    %144 = tpu.matmul %143, %141, %cst_145 {dimension_numbers = #tpu.dot_dimension_numbers<[1], [0], [0], [1], [0, 0, 1, 1], [], []>} : vector<1x2xf32>, vector<2x64xf32>, vector<1x64xf32> -> vector<1x64xf32>
    %c0_146 = arith.constant 0 : index
    %c0_147 = arith.constant 0 : index
    %c0_148 = arith.constant 0 : index
    %145 = vector.load %arg15[%c0_146, %c0_147, %c0_148] : memref<2x64x1xf32, #tpu.memory_space<vmem>>, vector<1x64x1xf32>
    %146 = vector.shape_cast %145 : vector<1x64x1xf32> to vector<64x1xf32>
    %cst_149 = arith.constant dense<0.000000e+00> : vector<1x1xf32>
    %147 = tpu.matmul %144, %146, %cst_149 {dimension_numbers = #tpu.dot_dimension_numbers<[1], [0], [0], [1], [0, 0, 1, 1], [], []>} : vector<1x64xf32>, vector<64x1xf32>, vector<1x1xf32> -> vector<1x1xf32>
    %c1_150 = arith.constant 1 : index
    %c0_151 = arith.constant 0 : index
    %c0_152 = arith.constant 0 : index
    %148 = vector.load %arg14[%c1_150, %c0_151, %c0_152] : memref<2x1x2xf32, #tpu.memory_space<vmem>>, vector<1x1x2xf32>
    %149 = vector.shape_cast %148 : vector<1x1x2xf32> to vector<1x2xf32>
    %cst_153 = arith.constant dense<0.000000e+00> : vector<1x64xf32>
    %150 = tpu.matmul %149, %141, %cst_153 {dimension_numbers = #tpu.dot_dimension_numbers<[1], [0], [0], [1], [0, 0, 1, 1], [], []>} : vector<1x2xf32>, vector<2x64xf32>, vector<1x64xf32> -> vector<1x64xf32>
    %c1_154 = arith.constant 1 : index
    %c0_155 = arith.constant 0 : index
    %c0_156 = arith.constant 0 : index
    %151 = vector.load %arg15[%c1_154, %c0_155, %c0_156] : memref<2x64x1xf32, #tpu.memory_space<vmem>>, vector<1x64x1xf32>
    %152 = vector.shape_cast %151 : vector<1x64x1xf32> to vector<64x1xf32>
    %cst_157 = arith.constant dense<0.000000e+00> : vector<1x1xf32>
    %153 = tpu.matmul %150, %152, %cst_157 {dimension_numbers = #tpu.dot_dimension_numbers<[1], [0], [0], [1], [0, 0, 1, 1], [], []>} : vector<1x64xf32>, vector<64x1xf32>, vector<1x1xf32> -> vector<1x1xf32>
    %154 = arith.addf %147, %153 : vector<1x1xf32>
    %c0_158 = arith.constant 0 : index
    %c0_159 = arith.constant 0 : index
    %155 = vector.load %arg16[%c0_158, %c0_159] : memref<1x1xf32, #tpu.memory_space<vmem>>, vector<1x1xf32>
    %156 = arith.addf %154, %155 : vector<1x1xf32>
    %c0_160 = arith.constant 0 : index
    %c0_161 = arith.constant 0 : index
    %c0_162 = arith.constant 0 : index
    %157 = vector.load %arg17[%c0_160, %c0_161, %c0_162] : memref<1x1x1xf32, #tpu.memory_space<vmem>>, vector<1x1x1xf32>
    %158 = vector.shape_cast %157 : vector<1x1x1xf32> to vector<1x1xf32>
    %159 = vector.shape_cast %156 : vector<1x1xf32> to vector<1x1x1xf32>
    tpu.vector_store %arg17[%c0_160, %c0_161, %c0_162], %159 {strides = array<i32>} : memref<1x1x1xf32, #tpu.memory_space<vmem>>, vector<1x1x1xf32>,
    return
  }
  func.func @transform_0(%arg0: i32) -> (i32, i32, i32) {
    %c0_i32 = arith.constant 0 : i32
    %c0_i32_0 = arith.constant 0 : i32
    %c0_i32_1 = arith.constant 0 : i32
    return %arg0, %c0_i32, %c0_i32_0 : i32, i32, i32
  }
  func.func @transform_1(%arg0: i32) -> (i32, i32, i32) {
    %c0_i32 = arith.constant 0 : i32
    %c0_i32_0 = arith.constant 0 : i32
    %c0_i32_1 = arith.constant 0 : i32
    %c0_i32_2 = arith.constant 0 : i32
    return %c0_i32, %c0_i32_0, %c0_i32_1 : i32, i32, i32
  }
  func.func @transform_2(%arg0: i32) -> (i32, i32, i32) {
    %c0_i32 = arith.constant 0 : i32
    %c0_i32_0 = arith.constant 0 : i32
    %c0_i32_1 = arith.constant 0 : i32
    %c0_i32_2 = arith.constant 0 : i32
    return %c0_i32, %c0_i32_0, %c0_i32_1 : i32, i32, i32
  }
  func.func @transform_3(%arg0: i32) -> (i32, i32) {
    %c0_i32 = arith.constant 0 : i32
    %c0_i32_0 = arith.constant 0 : i32
    %c0_i32_1 = arith.constant 0 : i32
    return %c0_i32, %c0_i32_0 : i32, i32
  }
  func.func @transform_4(%arg0: i32) -> (i32, i32, i32) {
    %c0_i32 = arith.constant 0 : i32
    %c0_i32_0 = arith.constant 0 : i32
    %c0_i32_1 = arith.constant 0 : i32
    %c0_i32_2 = arith.constant 0 : i32
    return %c0_i32, %c0_i32_0, %c0_i32_1 : i32, i32, i32
  }
  func.func @transform_5(%arg0: i32) -> (i32, i32, i32) {
    %c0_i32 = arith.constant 0 : i32
    %c0_i32_0 = arith.constant 0 : i32
    %c0_i32_1 = arith.constant 0 : i32
    %c0_i32_2 = arith.constant 0 : i32
    return %c0_i32, %c0_i32_0, %c0_i32_1 : i32, i32, i32
  }
  func.func @transform_6(%arg0: i32) -> (i32, i32) {
    %c0_i32 = arith.constant 0 : i32
    %c0_i32_0 = arith.constant 0 : i32
    %c0_i32_1 = arith.constant 0 : i32
    return %c0_i32, %c0_i32_0 : i32, i32
  }
  func.func @transform_7(%arg0: i32) -> (i32, i32, i32) {
    %c0_i32 = arith.constant 0 : i32
    %c0_i32_0 = arith.constant 0 : i32
    %c0_i32_1 = arith.constant 0 : i32
    %c0_i32_2 = arith.constant 0 : i32
    return %c0_i32, %c0_i32_0, %c0_i32_1 : i32, i32, i32
  }
  func.func @transform_8(%arg0: i32) -> (i32, i32, i32) {
    %c0_i32 = arith.constant 0 : i32
    %c0_i32_0 = arith.constant 0 : i32
    %c0_i32_1 = arith.constant 0 : i32
    %c0_i32_2 = arith.constant 0 : i32
    return %c0_i32, %c0_i32_0, %c0_i32_1 : i32, i32, i32
  }
  func.func @transform_9(%arg0: i32) -> (i32, i32) {
    %c0_i32 = arith.constant 0 : i32
    %c0_i32_0 = arith.constant 0 : i32
    %c0_i32_1 = arith.constant 0 : i32
    return %c0_i32, %c0_i32_0 : i32, i32
  }
  func.func @transform_10(%arg0: i32) -> (i32, i32, i32) {
    %c0_i32 = arith.constant 0 : i32
    %c0_i32_0 = arith.constant 0 : i32
    %c0_i32_1 = arith.constant 0 : i32
    %c0_i32_2 = arith.constant 0 : i32
    return %c0_i32, %c0_i32_0, %c0_i32_1 : i32, i32, i32
  }
  func.func @transform_11(%arg0: i32) -> (i32, i32, i32) {
    %c0_i32 = arith.constant 0 : i32
    %c0_i32_0 = arith.constant 0 : i32
    %c0_i32_1 = arith.constant 0 : i32
    %c0_i32_2 = arith.constant 0 : i32
    return %c0_i32, %c0_i32_0, %c0_i32_1 : i32, i32, i32
  }
  func.func @transform_12(%arg0: i32) -> (i32, i32) {
    %c0_i32 = arith.constant 0 : i32
    %c0_i32_0 = arith.constant 0 : i32
    %c0_i32_1 = arith.constant 0 : i32
    return %c0_i32, %c0_i32_0 : i32, i32
  }
  func.func @transform_13(%arg0: i32) -> (i32, i32, i32) {
    %c0_i32 = arith.constant 0 : i32
    %c0_i32_0 = arith.constant 0 : i32
    %c0_i32_1 = arith.constant 0 : i32
    %c0_i32_2 = arith.constant 0 : i32
    return %c0_i32, %c0_i32_0, %c0_i32_1 : i32, i32, i32
  }
  func.func @transform_14(%arg0: i32) -> (i32, i32, i32) {
    %c0_i32 = arith.constant 0 : i32
    %c0_i32_0 = arith.constant 0 : i32
    %c0_i32_1 = arith.constant 0 : i32
    %c0_i32_2 = arith.constant 0 : i32
    return %c0_i32, %c0_i32_0, %c0_i32_1 : i32, i32, i32
  }
  func.func @transform_15(%arg0: i32) -> (i32, i32) {
    %c0_i32 = arith.constant 0 : i32
    %c0_i32_0 = arith.constant 0 : i32
    %c0_i32_1 = arith.constant 0 : i32
    return %c0_i32, %c0_i32_0 : i32, i32
  }
  func.func @transform_16(%arg0: i32) -> (i32, i32, i32) {
    %c0_i32 = arith.constant 0 : i32
    %c0_i32_0 = arith.constant 0 : i32
    %c0_i32_1 = arith.constant 0 : i32
    return %arg0, %c0_i32, %c0_i32_0 : i32, i32, i32
  }
}

</mosaic_0001>

<bundles_post_ra>
// kernel: discriminator_forward.1
= control target key start
LH: loop header
LB: loop body
LE: loop exit
PB: predicated region body
PF: predicated region fallthrough
CT: control target
= control target key end

     0   :  { %s5716_s0 = inlined_call_operand.hbm [shape: f32[2,32,32], index: 0, kind: input, shape index: {}]   ;;  %s5717_s1 = inlined_call_operand.hbm [shape: f32[4,16,32], index: 1, kind: input, shape index: {}]   ;;  %s5718_s2 = inlined_call_operand.hbm [shape: f32[4,32,64], index: 2, kind: input, shape index: {}]   ;;  %s5719_s3 = inlined_call_operand.vmem [shape: f32[1,64], index: 3, kind: input, shape index: {}]   ;;  %s5720_s4 = inlined_call_operand.hbm [shape: f32[4,8,16], index: 4, kind: input, shape index: {}]   ;;  %s5721_s5 = inlined_call_operand.hbm [shape: f32[4,64,64], index: 5, kind: input, shape index: {}]   ;;  %s5722_s6 = inlined_call_operand.vmem [shape: f32[1,64], index: 6, kind: input, shape index: {}]   ;;  %s5723_s7 = inlined_call_operand.vmem [shape: f32[4,4,8], index: 7, kind: input, shape index: {}]   ;;  %s5724_s8 = inlined_call_operand.hbm [shape: f32[4,64,64], index: 8, kind: input, shape index: {}]   ;;  %s5725_s9 = inlined_call_operand.vmem [shape: f32[1,64], index: 9, kind: input, shape index: {}]   ;;  %s5726_s10 = inlined_call_operand.vmem [shape: f32[4,2,4], index: 10, kind: input, shape index: {}]   ;;  %s5727_s11 = inlined_call_operand.hbm [shape: f32[4,64,64], index: 11, kind: input, shape index: {}]   ;;  %s5728_s12 = inlined_call_operand.vmem [shape: f32[1,64], index: 12, kind: input, shape index: {}]   ;;  %s5729_s13 = inlined_call_operand.vmem [shape: f32[2,1,2], index: 13, kind: input, shape index: {}]   ;;  %s5730_s14 = inlined_call_operand.hbm [shape: f32[2,64,1], index: 14, kind: input, shape index: {}]   ;;  %s5731_s15 = inlined_call_operand.<no memory space> [shape: f32[1,1], index: 15, kind: input, shape index: {}]   ;;  %s5732_s16 = inlined_call_operand.vmem [shape: f32[2,1,1], index: 16, kind: output, shape index: {}]  }
   0x1   :  { %5739 = sst [smem:[#allocation21_spill]] %s5716_s0  ;;  %v21_v0 = vstv %s5731_s15 }
   0x2   :  { %5740 = sst [smem:[#allocation22_spill]] %s5717_s1  ;;  %22 = vst [vmem:[#allocation2] sm:$0x1] %v21_v0 }
   0x3   :  { %5741 = sst [smem:[#allocation23_spill]] %s5723_s7 }
   0x4   :  { %5742 = sst [smem:[#allocation24_spill]] %s5725_s9 }
   0x5   :  { %5743 = sst [smem:[#allocation25_spill]] %s5726_s10 }
   0x6   :  { %5744 = sst [smem:[#allocation26_spill]] %s5728_s12 }
   0x7   :  { %5745 = sst [smem:[#allocation27_spill]] %s5729_s13 }
   0x8   :  { %5746 = sst [smem:[#allocation28_spill]] %s5732_s16 }
   0x9   :  { %23 = vsyncpa [#allocation4], 0 }
   0xa   :  { %25 = vsyncpa [#allocation4 + $0x1], 0 }
   0xb   :  { %26 = vsyncpa [#allocation6], 0 }
   0xc   :  { %27 = vsyncpa [#allocation9], 0 }
   0xd   :  { %28 = vsyncpa [#allocation12], 0 }
   0xe   :  { %29 = vsyncpa [#allocation15], 0  ;;  %s5184_s23 = smov 0   ;;  %s5186_s24 = smov 0  }
   0xf   :  { %s5188_s25 = smov 0   ;;  %s5190_s26 = smov 0  }
  0x10 LB: > { %s5083_s15 = smov [#allocation5]   ;;  %s5205_s28 = sadd.s32 4294967295, %s5081_s26   ;;  %s5081_s26 = sphi %s5190_s26, %s5773_s26   ;;  %s5077_s25 = sphi %s5188_s25, %s5772_s25   ;;  %s5073_s24 = sphi %s5186_s24, %s5771_s24   ;;  %s5069_s23 = sphi %s5184_s23, %s5770_s23  }
  0x11   : > { %s419_s27 = sshll.u32 %s5083_s15, 4  ;;  %p3717_p0 = scmp.ge.s32.totalorder %s5081_s26, 1  ;;  %s5210_s27 = int_to_ptr.vmem [resolvable:$true] %s419_s27 }
  0x12   : > { %p5737_p1 = scmp.eq.s32.totalorder %s5205_s28, 0  ;;  %p407_p2 = scmp.lt.s32.totalorder %s5081_s26, 3 }
  0x13   : > { %s5084_s30 = smov [#allocation8]   ;;  %s5085_s18 = smov [#allocation11]  }
  0x14   : > { %p5212_p3 = pnand %p3717_p0, %p407_p2  ;;  %s448_s0 = sshll.u32 %s5084_s30, 4  ;;  %s5224_s0 = int_to_ptr.vmem [resolvable:$true] %s448_s0 }
  0x15   : > { %s480_s19 = sshll.u32 %s5085_s18, 4  ;;  %s5749_s1 = sld [smem:[#allocation22_spill]]  ;;  %s5226_s19 = int_to_ptr.vmem [resolvable:$true] %s480_s19 }
  0x16   : > { %s5747_s29 = scalar_select %p5212_p3, 1, 0 }
  0x17   : > { %p4720_p4 = pneg %p5212_p3 }
  0x19   : > { %p5220_p5 = pnand %p4720_p4, %p5737_p1 }
  0x1b   : > { %s4805_s22 = scalar_lea.hbm %s5749_s1, 1024  ;;  %p5236_p7 = pneg %p5220_p5 }
  0x1c   : > { %p4806_p6 = scmp.ne.s32.totalorder %s5749_s1, %s4805_s22  ;;  %p4812_p10 = scmp.lt.u32.totalorder %s4805_s22, %s5749_s1 }
  0x1e   : > { %p4808_p8 = pnand %p5236_p7, %p4806_p6 }
  0x20   : > { %p4809_p9 = pneg %p4808_p8 }
  0x22   : > { %p4814_p11 = pnand %p4812_p10, %p4809_p9 }
  0x24   : > { %4817 = shalt.err (!%p4814_p11)
}
  0x25   : > { %s4818_s16 = scalar_lea.vmem %s5210_s27, 1024  ;;  %p4826_p2 = scmp.lt.s32.totalorder %s5210_s27, %s5210_s27 }
  0x26   : > { %p4819_p12 = scmp.ne.s32.totalorder %s5210_s27, %s4818_s16  ;;  %p4827_p4 = scmp.lt.s32.totalorder %s4818_s16, %s4818_s16 }
  0x28   : > { %p4821_p13 = pnand %p4819_p12, %p5236_p7  ;;  %p4828_p6 = por %p4827_p4, %p4826_p2 }
  0x2a   : > { %p4822_p0 = pneg %p4821_p13 }
  0x2c   : > { %p4829_p8 = pnand %p4828_p6, %p4822_p0 }
  0x2e   : > { %4832 = shalt.err (!%p4829_p8)
}
  0x2f   : > { %s5086_s20 = smov 128   ;;  %s5087_s13 = smov 8  }
  0x30   : > { %4723 = dma.hbm_to_vmem [thread:$0]  (!%p5220_p5), %s5749_s1, 1024, %s5210_s27, [#allocation6], %s5086_s20, %s5086_s20, %s5087_s13  }
  0x31   : > { %s4833_s16 = scalar_lea.hbm %s5720_s4, 512 }
  0x32   : > { %p4834_p9 = scmp.ne.s32.totalorder %s5720_s4, %s4833_s16  ;;  %p4840_p12 = scmp.lt.u32.totalorder %s4833_s16, %s5720_s4 }
  0x34   : > { %p4836_p10 = pnand %p4834_p9, %p5236_p7 }
  0x36   : > { %p4837_p11 = pneg %p4836_p10 }
  0x38   : > { %p4842_p13 = pnand %p4840_p12, %p4837_p11 }
  0x3a   : > { %4845 = shalt.err (!%p4842_p13)
}
  0x3b   : > { %s4846_s27 = scalar_lea.vmem %s5224_s0, 512  ;;  %p4854_p6 = scmp.lt.s32.totalorder %s5224_s0, %s5224_s0 }
  0x3c   : > { %p4847_p0 = scmp.ne.s32.totalorder %s5224_s0, %s4846_s27  ;;  %p4855_p8 = scmp.lt.s32.totalorder %s4846_s27, %s4846_s27 }
  0x3e   : > { %p4849_p2 = pnand %p4847_p0, %p5236_p7  ;;  %p4856_p9 = por %p4855_p8, %p4854_p6 }
  0x40   : > { %p4850_p4 = pneg %p4849_p2 }
  0x42   : > { %p4857_p10 = pnand %p4856_p9, %p4850_p4 }
  0x44   : > { %4860 = shalt.err (!%p4857_p10)
}
  0x45   : > { %4729 = dma.hbm_to_vmem [thread:$0]  (!%p5220_p5), %s5720_s4, 512, %s5224_s0, [#allocation9], %s5086_s20, %s5086_s20, %s5087_s13  }
  0x46   : > { %s4861_s21 = scalar_lea.hbm %s5724_s8, 4096 }
  0x47   : > { %p4862_p11 = scmp.ne.s32.totalorder %s5724_s8, %s4861_s21  ;;  %p4868_p0 = scmp.lt.u32.totalorder %s4861_s21, %s5724_s8 }
  0x49   : > { %p4864_p12 = pnand %p4862_p11, %p5236_p7 }
  0x4b   : > { %p4865_p13 = pneg %p4864_p12 }
  0x4d   : > { %p4870_p2 = pnand %p4868_p0, %p4865_p13 }
  0x4f   : > { %4873 = shalt.err (!%p4870_p2)
}
  0x50   : > { %s4874_s0 = scalar_lea.vmem %s5226_s19, 4096  ;;  %p4882_p9 = scmp.lt.s32.totalorder %s5226_s19, %s5226_s19 }
  0x51   : > { %p4875_p4 = scmp.ne.s32.totalorder %s5226_s19, %s4874_s0  ;;  %p4883_p10 = scmp.lt.s32.totalorder %s4874_s0, %s4874_s0 }
  0x53   : > { %p4877_p6 = pnand %p4875_p4, %p5236_p7  ;;  %p4884_p11 = por %p4883_p10, %p4882_p9 }
  0x55   : > { %p4878_p8 = pneg %p4877_p6 }
  0x57   : > { %p4885_p12 = pnand %p4884_p11, %p4878_p8 }
  0x59   : > { %4888 = shalt.err (!%p4885_p12)
}
  0x5a   : > { %4735 = dma.hbm_to_vmem [thread:$0]  (!%p5220_p5), %s5724_s8, 4096, %s5226_s19, [#allocation12], %s5086_s20, %s5086_s20, %s5087_s13  }
  0x5b   : > { %s5088_s9 = smov [#allocation7]   ;;  %s5089_s12 = smov [#allocation10]  }
  0x5c   : > { %s432_s10 = sshll.u32 %s5088_s9, 4  ;;  %s461_s21 = sshll.u32 %s5089_s12, 4  ;;  %s433_s10 = int_to_ptr.vmem [resolvable:$true] %s432_s10  ;;  %s462_s21 = int_to_ptr.vmem [resolvable:$true] %s461_s21 }
  0x5d   : > { %s4889_s18 = scalar_lea.hbm %s5718_s2, 2048 }
  0x5e   : > { %p4890_p13 = scmp.ne.s32.totalorder %s5718_s2, %s4889_s18  ;;  %p4896_p4 = scmp.lt.u32.totalorder %s4889_s18, %s5718_s2 }
  0x60   : > { %p4892_p0 = pnand %p4890_p13, %p5236_p7 }
  0x62   : > { %p4893_p2 = pneg %p4892_p0 }
  0x64   : > { %p4898_p6 = pnand %p4896_p4, %p4893_p2 }
  0x66   : > { %4901 = shalt.err (!%p4898_p6)
}
  0x67   : > { %s4902_s19 = scalar_lea.vmem %s433_s10, 2048  ;;  %p4910_p11 = scmp.lt.s32.totalorder %s433_s10, %s433_s10 }
  0x68   : > { %p4903_p8 = scmp.ne.s32.totalorder %s433_s10, %s4902_s19  ;;  %p4911_p12 = scmp.lt.s32.totalorder %s4902_s19, %s4902_s19 }
  0x6a   : > { %p4905_p9 = pnand %p4903_p8, %p5236_p7  ;;  %p4912_p1 = por %p4911_p12, %p4910_p11 }
  0x6c   : > { %p4906_p10 = pneg %p4905_p9 }
  0x6e   : > { %p4913_p3 = pnand %p4912_p1, %p4906_p10 }
  0x70   : > { %4916 = shalt.err (!%p4913_p3)
}
  0x71   : > { %4726 = dma.hbm_to_vmem [thread:$0]  (!%p5220_p5), %s5718_s2, 2048, %s433_s10, [#allocation6], %s5086_s20, %s5086_s20, %s5087_s13  }
  0x72   : > { %s4917_s22 = scalar_lea.hbm %s5721_s5, 4096 }
  0x73   : > { %p4918_p1 = scmp.ne.s32.totalorder %s5721_s5, %s4917_s22  ;;  %p4924_p0 = scmp.lt.u32.totalorder %s4917_s22, %s5721_s5 }
  0x75   : > { %p4920_p3 = pnand %p4918_p1, %p5236_p7 }
  0x77   : > { %p4921_p13 = pneg %p4920_p3 }
  0x79   : > { %p4926_p2 = pnand %p4924_p0, %p4921_p13 }
  0x7b   : > { %4929 = shalt.err (!%p4926_p2)
}
  0x7c   : > { %s4930_s27 = scalar_lea.vmem %s462_s21, 4096  ;;  %p4938_p9 = scmp.lt.s32.totalorder %s462_s21, %s462_s21 }
  0x7d   : > { %p4931_p4 = scmp.ne.s32.totalorder %s462_s21, %s4930_s27  ;;  %p4939_p10 = scmp.lt.s32.totalorder %s4930_s27, %s4930_s27 }
  0x7f   : > { %p4933_p6 = pnand %p4931_p4, %p5236_p7  ;;  %p4940_p11 = por %p4939_p10, %p4938_p9 }
  0x81   : > { %p4934_p8 = pneg %p4933_p6 }
  0x83   : > { %p4941_p12 = pnand %p4940_p11, %p4934_p8 }
  0x85   : > { %4944 = shalt.err (!%p4941_p12)
}
  0x86   : > { %4732 = dma.hbm_to_vmem [thread:$0]  (!%p5220_p5), %s5721_s5, 4096, %s462_s21, [#allocation9], %s5086_s20, %s5086_s20, %s5087_s13  }
  0x87   : > { %s5090_s1 = smov [#allocation13]   ;;  %s5091_s9 = smov [#allocation14]  }
  0x88   : > { %s499_s7 = sshll.u32 %s5090_s1, 4  ;;  %s518_s12 = sshll.u32 %s5091_s9, 4  ;;  %s500_s7 = int_to_ptr.vmem [resolvable:$true] %s499_s7  ;;  %s519_s12 = int_to_ptr.vmem [resolvable:$true] %s518_s12 }
  0x89   : > { %s4945_s18 = scalar_lea.hbm %s5727_s11, 4096 }
  0x8a   : > { %p4946_p1 = scmp.ne.s32.totalorder %s5727_s11, %s4945_s18  ;;  %p4952_p0 = scmp.lt.u32.totalorder %s4945_s18, %s5727_s11 }
  0x8c   : > { %p4948_p3 = pnand %p4946_p1, %p5236_p7 }
  0x8e   : > { %p4949_p13 = pneg %p4948_p3 }
  0x90   : > { %p4954_p2 = pnand %p4952_p0, %p4949_p13 }
  0x92   : > { %4957 = shalt.err (!%p4954_p2)
}
  0x93   : > { %s4958_s21 = scalar_lea.vmem %s500_s7, 4096  ;;  %p4966_p9 = scmp.lt.s32.totalorder %s500_s7, %s500_s7 }
  0x94   : > { %p4959_p4 = scmp.ne.s32.totalorder %s500_s7, %s4958_s21  ;;  %p4967_p10 = scmp.lt.s32.totalorder %s4958_s21, %s4958_s21 }
  0x96   : > { %p4961_p6 = pnand %p4959_p4, %p5236_p7  ;;  %p4968_p11 = por %p4967_p10, %p4966_p9 }
  0x98   : > { %p4962_p8 = pneg %p4961_p6 }
  0x9a   : > { %p4969_p12 = pnand %p4968_p11, %p4962_p8 }
  0x9c   : > { %4972 = shalt.err (!%p4969_p12)
}
  0x9d   : > { %4738 = dma.hbm_to_vmem [thread:$0]  (!%p5220_p5), %s5727_s11, 4096, %s500_s7, [#allocation12], %s5086_s20, %s5086_s20, %s5087_s13  }
  0x9e   : > { %s4973_s15 = scalar_lea.hbm %s5730_s14, 2048 }
  0x9f   : > { %p4974_p1 = scmp.ne.s32.totalorder %s5730_s14, %s4973_s15  ;;  %p4980_p0 = scmp.lt.u32.totalorder %s4973_s15, %s5730_s14 }
  0xa1   : > { %p4976_p3 = pnand %p4974_p1, %p5236_p7 }
  0xa3   : > { %p4977_p13 = pneg %p4976_p3 }
  0xa5   : > { %p4982_p2 = pnand %p4980_p0, %p4977_p13 }
  0xa7   : > { %4985 = shalt.err (!%p4982_p2)
}
  0xa8   : > { %s4986_s10 = scalar_lea.vmem %s519_s12, 2048  ;;  %p4994_p9 = scmp.lt.s32.totalorder %s519_s12, %s519_s12 }
  0xa9   : > { %p4987_p4 = scmp.ne.s32.totalorder %s519_s12, %s4986_s10  ;;  %p4995_p10 = scmp.lt.s32.totalorder %s4986_s10, %s4986_s10 }
  0xab   : > { %p4989_p6 = pnand %p4987_p4, %p5236_p7  ;;  %p4996_p11 = por %p4995_p10, %p4994_p9 }
  0xad   : > { %p4990_p8 = pneg %p4989_p6 }
  0xaf   : > { %p4997_p12 = pnand %p4996_p11, %p4990_p8 }
  0xb1   : > { %5000 = shalt.err (!%p4997_p12)
}
  0xb2   : > { %4741 = dma.hbm_to_vmem [thread:$0]  (!%p5220_p5), %s5730_s14, 2048, %s519_s12, [#allocation15], %s5086_s20, %s5086_s20, %s5087_s13  }
  0xb3   : > { %s5397_s17 = sadd.s32 1, %s5081_s26   ;;  %s42_s19 = sadd.s32 1, %s5077_s25 }
  0xb4   : > { %s39_s30 = ssub.s32 %s5081_s26, %s5397_s17  ;;  %p49_p1 = scmp.ne.s32.totalorder %s5077_s25, %s5073_s24 }
  0xb5   : > { %p40_p7 = scmp.eq.s32.totalorder %s39_s30, 0  ;;  %p50_p3 = scmp.eq.s32.totalorder %s5081_s26, 0 }
  0xb6   : > { %p55_p13 = scmp.ne.s32.totalorder %s5073_s24, %s5069_s23  ;;  %p5751_p2 = scmp.eq.s32.totalorder %s5205_s28, 0 }
  0xb7   : > { %s5408_s1 = scalar_select %p40_p7, %s5077_s25, %s42_s19  }
  0xb8   : > { %p51_p0 = por %p50_p3, %p49_p1  ;;  %p5412_p4 = por %p5751_p2, %p55_p13 }
  0xb9   : > { %p4753_p6 = scmp.lt.s32.totalorder %s5081_s26, 2  ;;  %s535_s22 = sand.u32 1, %s5077_s25  }
  0xba   : > { %s3726_s12 = sshll.u32 %s535_s22, 5  ;;  %s3801_s15 = sshll.u32 %s5081_s26, 9 }
  0xbb   : > { %s5753_s0 = sld [smem:[#allocation21_spill]]  ;;  %s539_s23 = scalar_lea.vmem [#allocation3], %s3726_s12 }
  0xbc   : > { %s546_s10 = sshll.u32 %s539_s23, 4  ;;  %p5426_p5 = pnand %p4753_p6, %p51_p0  ;;  %s5424_s10 = int_to_ptr.vmem [resolvable:$true] %s546_s10 }
  0xbd   : > { %s5430_s26 = scalar_lea.sflag [#allocation4], %s535_s22 }
  0xbe   : > { %p5003_p9 = pneg %p5426_p5 }
  0xc1   : > { %s5422_s27 = scalar_lea.hbm %s5753_s0, %s3801_s15  ;;  %s5006_s12 = scalar_lea.hbm %s5753_s0, 1024 }
  0xc2   : > { %s5001_s21 = scalar_lea.hbm %s5422_s27, 512  ;;  %p5007_p12 = scmp.lt.u32.totalorder %s5422_s27, %s5753_s0 }
  0xc3   : > { %p5002_p8 = scmp.ne.s32.totalorder %s5422_s27, %s5001_s21  ;;  %p5008_p7 = scmp.lt.u32.totalorder %s5006_s12, %s5001_s21 }
  0xc4   : > { %p5010_p3 = scmp.lt.u32.totalorder %s5001_s21, %s5422_s27 }
  0xc5   : > { %p5004_p10 = pnand %p5003_p9, %p5002_p8  ;;  %p5009_p1 = por %p5008_p7, %p5007_p12 }
  0xc7   : > { %p5005_p11 = pneg %p5004_p10  ;;  %p5011_p13 = por %p5010_p3, %p5009_p1 }
  0xc9   : > { %p5012_p0 = pnand %p5011_p13, %p5005_p11 }
  0xcb   : > { %5015 = shalt.err (!%p5012_p0)
}
  0xcc   : > { %s5016_s22 = scalar_lea.vmem %s5424_s10, 512  ;;  %s5092_s16 = smov [#allocation3]  }
  0xcd   : > { %p5017_p2 = scmp.ne.s32.totalorder %s5424_s10, %s5016_s22  ;;  %s5021_s23 = sshll.u32 %s5092_s16, 4  ;;  %s5022_s23 = int_to_ptr.vmem [resolvable:$false] %s5021_s23 }
  0xce   : > { %s5023_s30 = scalar_lea.vmem %s5022_s23, 1024  ;;  %p5024_p10 = scmp.lt.s32.totalorder %s5424_s10, %s5022_s23 }
  0xcf   : > { %p5019_p6 = pnand %p5017_p2, %p5003_p9  ;;  %p5025_p12 = scmp.lt.s32.totalorder %s5023_s30, %s5016_s22 }
  0xd1   : > { %p5020_p8 = pneg %p5019_p6  ;;  %p5026_p7 = por %p5025_p12, %p5024_p10 }
  0xd3   : > { %p5027_p1 = pnand %p5026_p7, %p5020_p8 }
  0xd5   : > { %5030 = shalt.err (!%p5027_p1)
}
  0xd6   : > { %4745 = dma.hbm_to_vmem [thread:$0]  (!%p5426_p5), %s5422_s27, 512, %s5424_s10, %s5430_s26, %s5086_s20, %s5086_s20, %s5087_s13  }
  0xd7   : > { %p5755_p9 = scmp.ne.s32.totalorder %s5747_s29, 0 }
  0xd8   : > { %s560_s21 = sand.u32 (!%p5755_p9), 1, %s5073_s24  }
  0xd9   : > { %558 = sbr.rel (%p5755_p9) target bundleno = 3109 (0xc25), region = 84  ;;  %s3730_s19 = sshll.u32 (!%p5755_p9), %s560_s21, 5 }
  0xda   : > { %s561_s12 = scalar_lea.sflag (!%p5755_p9), [#allocation4], %s560_s21  ;;  %s564_s15 = scalar_lea.vmem (!%p5755_p9), [#allocation3], %s3730_s19 }
  0xe0   : > { %5048 = dma.done.wait (%p5412_p4), %s561_s12, 512  }
  0xe1   : > { %5050 = vsyncadd (%p5412_p4), %s561_s12, 4294966784  ;;  %p5756_p11 = scmp.eq.s32.totalorder %s5205_s28, 0 }
  0xe3   : > { %5052 = dma.done.wait (%p5756_p11), [#allocation6], 3072   ;;  %p5757_p3 = pmov %p5756_p11 }
  0xe5   : > { %5054 = vsyncadd (%p5757_p3), [#allocation6], 4294964224  ;;  %p5758_p5 = pmov %p5757_p3 }
  0xe6   : > { %p5759_p13 = pmov %p5757_p3 }
  0xe7   : > { %5056 = dma.done.wait (%p5758_p5), [#allocation9], 4608  }
  0xe8   : > { %5058 = vsyncadd (%p5759_p13), [#allocation9], 4294962688  ;;  %p5760_p0 = pmov %p5757_p3 }
  0xea   : > { %5060 = dma.done.wait (%p5760_p0), [#allocation12], 8192   ;;  %p5761_p2 = pmov %p5760_p0 }
  0xeb   : > { %p5762_p4 = pmov %p5760_p0 }
  0xec   : > { %5062 = vsyncadd (%p5761_p2), [#allocation12], 4294959104 }
  0xed   : > { %5064 = dma.done.wait (%p5762_p4), [#allocation15], 2048   ;;  %p5763_p6 = pmov %p5760_p0 }
  0xee   : > { %vm648_vm0 = vcmask 261120   ;;  %v642_v1 = vld [vmem:[%s564_s15] sm:$0xff]  ;;  %v643_v2 = vld [vmem:[%s564_s15 + $0x8] sm:$0xff]  ;;  %v644_v3 = vld [vmem:[%s564_s15 + $0x10] sm:$0xff]  ;;  %v5093_v47 = vmov 0.0|0.0   ;;  %vm5094_vm1 = vmmov 0  }
  0xef   : > { %5066 = vsyncadd (%p5763_p6), [#allocation15], 4294965248  ;;  %v4440_v4 = vpack.c.bf16 %v643_v2, %v642_v1  ;;  %v645_v5 = vld [vmem:[%s564_s15 + $0x18] sm:$0xff]  ;;  %v735_v6 = vld [vmem:[#allocation5 + $0x10] sm:$0xff]  ;;  %v5095_v48 = vmov 0.0   ;;  %vm1345_vm4 = vcmask 130048  }
  0xf0   : > { %v4444_v7 = vpack.c.bf16 %v645_v5, %v644_v3  ;;  %4027 = vmatprep.mubr.msk.f32.mxu1 %vm648_vm0, %v735_v6  ;;  %v646_v8 = vld [vmem:[#allocation5] sm:$0xff]  ;;  %v820_v10 = vld [vmem:[#allocation7 + $0x28] sm:$0xff]  ;;  %v821_v12 = vld [vmem:[#allocation7 + $0x30] sm:$0xff]  ;;  %vm1511_vm5 = vcmask 523264   ;;  %s5764_s7 = sld [smem:[#allocation23_spill]]  ;;  %vm1986_vm7 = vcmask 64512  }
  0xf1   : > { %4449 = vmatprep.subr.bf16.mxu1 %v4440_v4  ;;  %4441 = vmatprep.subr.bf16.mxu0 %v4440_v4  ;;  %v819_v9 = vld [vmem:[#allocation7 + $0x20] sm:$0xff]  ;;  %v822_v13 = vld [vmem:[#allocation7 + $0x38] sm:$0xff]  ;;  %v647_v15 = vld [vmem:[#allocation5 + $0x8] sm:$0xff]  ;;  %s5765_s12 = sld [smem:[#allocation24_spill]]  ;;  %vm2630_vm9 = vcmask 1043456   ;;  %s5766_s20 = sld [smem:[#allocation25_spill]] }
  0xf2   : > { %4451 = vmatpush3.bf16.msra.mxu1 %v4440_v4  ;;  %4443 = vmatpush3.bf16.msra.mxu0 %v4440_v4  ;;  %v4456_v11 = vpack.c.bf16 %v820_v10, %v819_v9  ;;  %v736_v14 = vld [vmem:[#allocation5 + $0x18] sm:$0xff]  ;;  %v986_v16 = vld [vmem:[#allocation5 + $0x20] sm:$0xff]  ;;  %v4460_v17 = vpack.c.bf16 %v822_v13, %v821_v12  ;;  %v987_v18 = vld [vmem:[#allocation5 + $0x28] sm:$0xff]  ;;  %vm2626_vm10 = vcmask 31744   ;;  %s5767_s23 = sld [smem:[#allocation26_spill]]  ;;  %vm3274_vm12 = vcmask 1041408  }
  0xf3   : > { %4453 = vmatprep.subr.bf16.mxu1 %v4444_v7  ;;  %4445 = vmatprep.subr.bf16.mxu0 %v4444_v7  ;;  %v1158_v19 = vld [vmem:[#allocation5 + $0x30] sm:$0xff]  ;;  %v1159_v20 = vld [vmem:[#allocation5 + $0x38] sm:$0xff]  ;;  %v730_v21 = vld [vmem:[#allocation7] sm:$0xff]  ;;  %s5768_s19 = sld [smem:[#allocation27_spill]]  ;;  %vm3270_vm13 = vcmask 15360   ;;  %p639_p8 = scmp.lt.s32.totalorder %s5205_s28, 1 }
  0xf4   : > { %4016 = vmatprep.mubr.msk.f32.mxu0 %vm648_vm0, %v646_v8  ;;  %v731_v22 = vld [vmem:[#allocation7 + $0x8] sm:$0xff]  ;;  %v732_v24 = vld [vmem:[#allocation7 + $0x10] sm:$0xff]  ;;  %v733_v25 = vld [vmem:[#allocation7 + $0x18] sm:$0xff]  ;;  %s5769_s9 = sld [smem:[#allocation28_spill]]  ;;  %vm3588_vm14 = vcmask 0  }
  0xf5   : > { %v4464_v23 = vpack.c.bf16 %v731_v22, %v730_v21  ;;  %v4468_v29 = vpack.c.bf16 %v733_v25, %v732_v24  ;;  %v1070_v31 = vld [vmem:[#allocation7 + $0x40] sm:$0xff]  ;;  %v1071_v32 = vld [vmem:[#allocation7 + $0x48] sm:$0xff]  ;;  %v1072_v34 = vld [vmem:[#allocation7 + $0x50] sm:$0xff]  ;;  %s5775_s28 = smov (!%p639_p8, %s5205_s28), 1 }
  0xf6   : > { %4455 = vmatpush3.bf16.msra.mxu1 %v4444_v7  ;;  %4447 = vmatpush3.bf16.msra.mxu0 %v4444_v7  ;;  %v4480_v33 = vpack.c.bf16 %v1071_v32, %v1070_v31  ;;  %v1073_v35 = vld [vmem:[#allocation7 + $0x58] sm:$0xff]  ;;  %v1242_v39 = vld [vmem:[#allocation7 + $0x60] sm:$0xff]  ;;  %v1243_v40 = vld [vmem:[#allocation7 + $0x68] sm:$0xff] }
  0xf7   : > { %4473 = vmatprep.subr.bf16.mxu1 %v4440_v4  ;;  %4457 = vmatprep.subr.bf16.mxu0 %v4456_v11  ;;  %v4484_v37 = vpack.c.bf16 %v1073_v35, %v1072_v34  ;;  %v4496_v41 = vpack.c.bf16 %v1243_v40, %v1242_v39  ;;  %v1244_v42 = vld [vmem:[#allocation7 + $0x70] sm:$0xff]  ;;  %v1245_v43 = vld [vmem:[#allocation7 + $0x78] sm:$0xff]  ;;  %v1419_v49 = vld [vmem:[#allocation10] sm:$0xff] }
  0xf8   : > { %v4500_v45 = vpack.c.bf16 %v1245_v43, %v1244_v42  ;;  %v1420_v50 = vld [vmem:[#allocation10 + $0x8] sm:$0xff]  ;;  %v1421_v52 = vld [vmem:[#allocation10 + $0x10] sm:$0xff]  ;;  %v1422_v53 = vld [vmem:[#allocation10 + $0x18] sm:$0xff] }
  0xf9   : > { %4028 = vmatmul.mubr.msk.f32.vlgmr.msra.gmra.mrb[0].mxu1 %vm648_vm0, %v736_v14  ;;  %4017 = vmatmul.mubr.msk.f32.vlgmr.msra.gmra.mrb[0].mxu0 %vm648_vm0, %v647_v15  ;;  %v4523_v51 = vpack.c.bf16 %v1420_v50, %v1419_v49  ;;  %v4526_v54 = vpack.c.bf16 %v1422_v53, %v1421_v52  ;;  %v1423_v55 = vld [vmem:[#allocation10 + $0x20] sm:$0xff]  ;;  %v1424_v56 = vld [vmem:[#allocation10 + $0x28] sm:$0xff]  ;;  %v1425_v58 = vld [vmem:[#allocation10 + $0x30] sm:$0xff] }
  0xfa   : > { %4475 = vmatpush3.bf16.msra.mxu1 %v4440_v4  ;;  %4060 = vmatprep.mubr.msk.f32.mxu1 %vm648_vm0, %v986_v16  ;;  %v4529_v57 = vpack.c.bf16 %v1424_v56, %v1423_v55  ;;  %v1426_v59 = vld [vmem:[#allocation10 + $0x38] sm:$0xff]  ;;  %v1503_v8 = vld [vmem:[#allocation10 + $0x40] sm:$0xff]  ;;  %v1504_v9 = vld [vmem:[#allocation10 + $0x48] sm:$0xff]  ;;  %s641_s27 = scalar_lea.vmem %s5769_s9, %s5775_s28 }
  0xfb   : > { %4477 = vmatprep.subr.bf16.mxu1 %v4444_v7  ;;  %4459 = vmatpush3.bf16.msra.mxu0 %v4456_v11  ;;  %v4532_v60 = vpack.c.bf16 %v1426_v59, %v1425_v58  ;;  %v3754_v61 = vld [vmem:[%s5719_s3] ss:$0 sm:$0xff]  ;;  %v1428_v10 = vld [vmem:[#allocation8 + $0x8] sm:$0xff]  ;;  %v4511_v11 = vpack.c.bf16 %v1504_v9, %v1503_v8  ;;  %v1505_v12 = vld [vmem:[#allocation10 + $0x50] sm:$0xff] }
  0xfc   : > { %4461 = vmatprep.subr.bf16.mxu0 %v4460_v17  ;;  %v1506_v13 = vld [vmem:[#allocation10 + $0x58] sm:$0xff]  ;;  %v1507_v15 = vld [vmem:[#allocation10 + $0x60] sm:$0xff]  ;;  %v1508_v16 = vld [vmem:[#allocation10 + $0x68] sm:$0xff] }
  0xfd   : > { %v4514_v14 = vpack.c.bf16 %v1506_v13, %v1505_v12  ;;  %v1892_v22 = vld [vmem:[#allocation10 + $0xc0] sm:$0xff]  ;;  %v1817_v25 = vld [vmem:[#allocation8 + $0x18] sm:$0xff]  ;;  %v1736_v35 = vld [vmem:[#allocation10 + $0x90] sm:$0xff] }
  0xfe   : > { %4479 = vmatpush3.bf16.msra.mxu1 %v4444_v7  ;;  %v1895_v31 = vld [vmem:[#allocation10 + $0xd8] sm:$0xff]  ;;  %v1738_v39 = vld [vmem:[#allocation10 + $0xa0] sm:$0xff]  ;;  %v1739_v40 = vld [vmem:[#allocation10 + $0xa8] sm:$0xff] }
  0xff   : > { %4489 = vmatprep.subr.bf16.mxu1 %v4440_v4  ;;  %4463 = vmatpush3.bf16.msra.mxu0 %v4460_v17  ;;  %v4517_v17 = vpack.c.bf16 %v1508_v16, %v1507_v15  ;;  %v1896_v42 = vld [vmem:[#allocation10 + $0xe0] sm:$0xff]  ;;  %v1897_v43 = vld [vmem:[#allocation10 + $0xe8] sm:$0xff]  ;;  %v1898_v50 = vld [vmem:[#allocation10 + $0xf0] sm:$0xff] }
 0x100   : > { %4465 = vmatprep.subr.bf16.mxu0 %v4464_v23  ;;  %v3763_v12 = vld [vmem:[%s5722_s6] ss:$0 sm:$0xff] }
 0x101   : > { %4061 = vmatmul.mubr.msk.f32.vlgmr.msra.gmra.mrb[2].mxu1 %vm648_vm0, %v987_v18  ;;  %v1509_v18 = vld [vmem:[#allocation10 + $0x70] sm:$0xff]  ;;  %v1985_v16 = vld [vmem:[%s5764_s7] sm:$0xf] }
 0x102   : > { %4491 = vmatpush3.bf16.msra.mxu1 %v4440_v4  ;;  %4082 = vmatprep.mubr.msk.f32.mxu1 %vm648_vm0, %v1158_v19  ;;  %v1510_v19 = vld [vmem:[#allocation10 + $0x78] sm:$0xff] }
 0x103   : > { %4493 = vmatprep.subr.bf16.mxu1 %v4444_v7 }
 0x106   : > { %4495 = vmatpush3.bf16.msra.mxu1 %v4444_v7  ;;  %v1344_v7 = vld [vmem:[#allocation8] sm:$0xff] }
 0x107   : > { %4504 = vmatprep.subr.bf16.mxu1 %v5093_v47 }
 0x109   : > { %4083 = vmatmul.mubr.msk.f32.vlgmr.msra.gmra.mrb[4].mxu1 %vm648_vm0, %v1159_v20  ;;  %v4520_v20 = vpack.c.bf16 %v1510_v19, %v1509_v18  ;;  %v2060_v18 = vld [vmem:[#allocation11] sm:$0xff]  ;;  %v2061_v19 = vld [vmem:[#allocation11 + $0x8] sm:$0xff] }
 0x10a   : > { %4100 = vmatprep.mubr.msk.f32.mxu1 %vm5094_vm1, %v5095_v48 }
 0x1cc   : > { %v4029_v26 = vpop.f32.mrb[0].mxu1  ;;  %v4018_v27 = vpop.f32.mrb[0].mxu0 }
 0x1cd   : > { %v809_v28 = vpop.f32.mrb[1].mxu1  ;;  %v721_v30 = vpop.f32.mrb[1].mxu0 }
 0x1ce   : > { %4038 = vmatprep.mubr.msk.f32.mxu0 %vm648_vm0, %v809_v28 }
 0x1cf   : > { %4039 = vmatmul.mubr.msk.f32.vlgmr.msra.gmra.mrb[2].mxu0 %vm648_vm0, %v4029_v26  ;;  %v1734_v26 = vld [vmem:[#allocation10 + $0x80] sm:$0xff] }
 0x1d0   : > { %4467 = vmatpush3.bf16.msra.mxu0 %v4464_v23  ;;  %4049 = vmatprep.mubr.msk.f32.mxu0 %vm648_vm0, %v721_v30  ;;  %v1893_v23 = vld [vmem:[#allocation10 + $0xc8] sm:$0xff]  ;;  %v1894_v30 = vld [vmem:[#allocation10 + $0xd0] sm:$0xff] }
 0x1d1   : > { %4469 = vmatprep.subr.bf16.mxu0 %v4468_v29  ;;  %v4553_v28 = vpack.c.bf16 %v1893_v23, %v1892_v22  ;;  %v2062_v22 = vld [vmem:[#allocation11 + $0x10] sm:$0xff]  ;;  %v2063_v23 = vld [vmem:[#allocation11 + $0x18] sm:$0xff] }
 0x1d4   : > { %4471 = vmatpush3.bf16.msra.mxu0 %v4468_v29  ;;  %v4062_v36 = vpop.f32.mrb[2].mxu1 }
 0x1d5   : > { %4481 = vmatprep.subr.bf16.mxu0 %v4480_v33  ;;  %v1060_v38 = vpop.f32.mrb[3].mxu1 }
 0x1d7   : > { %4050 = vmatmul.mubr.msk.f32.vlgmr.msra.gmra.mrb[2].mxu0 %vm648_vm0, %v4018_v27  ;;  %v1735_v27 = vld [vmem:[#allocation10 + $0x88] sm:$0xff] }
 0x1d8   : > { %4483 = vmatpush3.bf16.msra.mxu0 %v4480_v33  ;;  %4071 = vmatprep.mubr.msk.f32.mxu0 %vm648_vm0, %v1060_v38  ;;  %v1659_v33 = vld [vmem:[#allocation8 + $0x10] sm:$0xff]  ;;  %v4538_v34 = vpack.c.bf16 %v1735_v27, %v1734_v26  ;;  %v2065_v26 = vld [vmem:[#allocation11 + $0x28] sm:$0xff] }
 0x1d9   : > { %4485 = vmatprep.subr.bf16.mxu0 %v4484_v37 }
 0x1dc   : > { %4487 = vmatpush3.bf16.msra.mxu0 %v4484_v37  ;;  %v4084_v44 = vpop.f32.mrb[4].mxu1  ;;  %v4556_v37 = vpack.c.bf16 %v1895_v31, %v1894_v30  ;;  %v2150_v31 = vld [vmem:[#allocation11 + $0x70] sm:$0xff] }
 0x1dd   : > { %4497 = vmatprep.subr.bf16.mxu0 %v4496_v41  ;;  %v1232_v46 = vpop.f32.mrb[5].mxu1 }
 0x1df   : > { %4072 = vmatmul.mubr.msk.f32.vlgmr.msra.gmra.mrb[2].mxu0 %vm648_vm0, %v4062_v36  ;;  %v1737_v36 = vld [vmem:[#allocation10 + $0x98] sm:$0xff] }
 0x1e0   : > { %4499 = vmatpush3.bf16.msra.mxu0 %v4496_v41  ;;  %4093 = vmatprep.mubr.msk.f32.mxu0 %vm648_vm0, %v1232_v46  ;;  %v4541_v38 = vpack.c.bf16 %v1737_v36, %v1736_v35  ;;  %v4544_v41 = vpack.c.bf16 %v1739_v40, %v1738_v39  ;;  %v1741_v46 = vld [vmem:[#allocation10 + $0xb8] sm:$0xff]  ;;  %v2375_v35 = vld [vmem:[#allocation11 + $0x88] sm:$0xff] }
 0x1e1   : > { %4501 = vmatprep.subr.bf16.mxu0 %v4500_v45  ;;  %v2377_v39 = vld [vmem:[#allocation11 + $0x98] sm:$0xff] }
 0x1e4   : > { %4503 = vmatpush3.bf16.msra.mxu0 %v4500_v45  ;;  %v1740_v45 = vld [vmem:[#allocation10 + $0xb0] sm:$0xff] }
 0x1e5   : > { %4522 = vmatprep.subr.bf16.mxu0 %v5093_v47  ;;  %v4547_v49 = vpack.c.bf16 %v1741_v46, %v1740_v45  ;;  %v2532_v45 = vld [vmem:[#allocation11 + $0xc0] sm:$0xff]  ;;  %v2533_v46 = vld [vmem:[#allocation11 + $0xc8] sm:$0xff] }
 0x1e7   : > { %4094 = vmatmul.mubr.msk.f32.vlgmr.msra.gmra.mrb[2].mxu0 %vm648_vm0, %v4084_v44  ;;  %v4559_v44 = vpack.c.bf16 %v1897_v43, %v1896_v42 }
 0x1e8   : > { %4145 = vmatprep.mubr.msk.f32.mxu0 %vm5094_vm1, %v5095_v48  ;;  %4524 = vmatpush3.bf16.msra.mxu0 %v4523_v51  ;;  %v1899_v51 = vld [vmem:[#allocation10 + $0xf8] sm:$0xff] }
 0x1e9   : > { %4525 = vmatprep.subr.bf16.mxu0 %v5093_v47  ;;  %v4562_v52 = vpack.c.bf16 %v1899_v51, %v1898_v50  ;;  %v4601_v50 = vpack.c.bf16 %v2533_v46, %v2532_v45  ;;  %v2378_v51 = vld [vmem:[#allocation11 + $0xa0] sm:$0xff]  ;;  %v2795_v45 = vld [vmem:[#allocation13 + $0x78] sm:$0xff] }
 0x1ec   : > { %4527 = vmatpush3.bf16.msra.mxu0 %v4526_v54 }
 0x1ed   : > { %4528 = vmatprep.subr.bf16.mxu0 %v5093_v47 }
 0x1f0   : > { %4530 = vmatpush3.bf16.msra.mxu0 %v4529_v57 }
 0x1f1   : > { %4531 = vmatprep.subr.bf16.mxu0 %v5093_v47 }
 0x1f4   : > { %4533 = vmatpush3.bf16.msra.mxu0 %v4532_v60 }
 0x1f5   : > { %4549 = vmatprep.subr.bf16.mxu0 %v5093_v47 }
 0x2ba   : > { %v4095_v62 = vpop.f32.mrb[2].mxu0 }
 0x2bb   : > { %v1337_v63 = vadd.f32 %v4095_v62, %v3754_v61  ;;  %v1318_v0 = vpop.f32.mrb[3].mxu0  ;;  %v2144_v62 = vld [vmem:[#allocation11 + $0x40] sm:$0xff] }
 0x2bc   : > { %v1336_v1 = vadd.f32 %v3754_v61, %v1318_v0 }
 0x2bd   : > { %vm1339_vm2 = vcmp.gt.f32.partialorder %v1337_v63, 0.0  ;;  %v1341_v2 = vmul.f32 0.2, %v1337_v63 }
 0x2be   : > { %vm1338_vm3 = vcmp.gt.f32.partialorder %v1336_v1, 0.0  ;;  %v1340_v3 = vmul.f32 0.2, %v1336_v1 }
 0x2bf   : > { %v1343_v4 = vsel %vm1339_vm2, %v1337_v63, %v1341_v2  ;;  %v2145_v63 = vld [vmem:[#allocation11 + $0x48] sm:$0xff]  ;;  %v2147_v2 = vld [vmem:[#allocation11 + $0x58] sm:$0xff] }
 0x2c0   : > { %v1342_v5 = vsel %vm1338_vm3, %v1336_v1, %v1340_v3  ;;  %v4565_v0 = vpack.c.bf16 %v2145_v63, %v2144_v62  ;;  %v2146_v1 = vld [vmem:[#allocation11 + $0x50] sm:$0xff] }
 0x2c1   : > { %v4505_v6 = vpack.c.bf16 %v1343_v4, %v1342_v5  ;;  %v4568_v3 = vpack.c.bf16 %v2147_v2, %v2146_v1  ;;  %v2148_v4 = vld [vmem:[#allocation11 + $0x60] sm:$0xff]  ;;  %v2149_v5 = vld [vmem:[#allocation11 + $0x68] sm:$0xff]  ;;  %v2538_v63 = vld [vmem:[#allocation11 + $0xf0] sm:$0xff] }
 0x2c3   : > { %4506 = vmatpush3.bf16.msra.mxu1 %v4505_v6 }
 0x2c4   : > { %4507 = vmatprep.subr.bf16.mxu1 %v5093_v47 }
 0x2c6   : > { %4101 = vmatmul.mubr.msk.f32.vlgmr.msra.gmra.mrb[6].mxu1 %vm1345_vm4, %v1344_v7 }
 0x2c7   : > { %4509 = vmatpush3.bf16.msra.mxu1 %v4505_v6  ;;  %4107 = vmatprep.mubr.msk.f32.mxu1 %vm5094_vm1, %v5095_v48 }
 0x2c8   : > { %4510 = vmatprep.subr.bf16.mxu1 %v5093_v47 }
 0x2ca   : > { %4108 = vmatmul.mubr.msk.f32.vlgmr.msra.gmra.mrb[8].mxu1 %vm1345_vm4, %v1428_v10 }
 0x2cb   : > { %4512 = vmatpush3.bf16.msra.mxu1 %v4511_v11  ;;  %4126 = vmatprep.mubr.msk.f32.mxu1 %vm5094_vm1, %v5095_v48 }
 0x2cc   : > { %4513 = vmatprep.subr.bf16.mxu1 %v5093_v47 }
 0x2cf   : > { %4515 = vmatpush3.bf16.msra.mxu1 %v4514_v14 }
 0x2d0   : > { %4516 = vmatprep.subr.bf16.mxu1 %v5093_v47 }
 0x2d3   : > { %4518 = vmatpush3.bf16.msra.mxu1 %v4517_v17 }
 0x2d4   : > { %4519 = vmatprep.subr.bf16.mxu1 %v5093_v47 }
 0x2d7   : > { %4521 = vmatpush3.bf16.msra.mxu1 %v4520_v20  ;;  %v3765_v20 = vld [vmem:[%s5764_s7 + $0x4] sm:$0xf] }
 0x2d8   : > { %4534 = vmatprep.subr.bf16.mxu1 %v5093_v47 }
 0x399   : > { %v1415_v21 = vpop.f32.mrb[6].mxu1 }
 0x39a   : > { %v4102_v24 = vpop.f32.mrb[7].mxu1  ;;  %4146 = vmatmul.mubr.msk.f32.vlgmr.msra.gmra.mrb[4].mxu0 %vm1511_vm5, %v1415_v21  ;;  %v4577_v21 = vpack.c.bf16 %v2061_v19, %v2060_v18  ;;  %v2793_v18 = vld [vmem:[#allocation13 + $0x68] sm:$0xff] }
 0x39b   : > { %4551 = vmatpush3.bf16.msra.mxu0 %v4505_v6  ;;  %4178 = vmatprep.mubr.msk.f32.mxu0 %vm5094_vm1, %v5095_v48  ;;  %v4580_v24 = vpack.c.bf16 %v2063_v23, %v2062_v22 }
 0x39c   : > { %4552 = vmatprep.subr.bf16.mxu0 %v5093_v47 }
 0x39d   : > { %v1498_v29 = vpop.f32.mrb[8].mxu1 }
 0x39e   : > { %v4109_v32 = vpop.f32.mrb[9].mxu1  ;;  %4127 = vmatmul.mubr.msk.f32.vlgmr.msra.gmra.mrb[10].mxu1 %vm1511_vm5, %v1498_v29  ;;  %4179 = vmatmul.mubr.msk.f32.vlgmr.msra.gmra.mrb[6].mxu0 %vm1345_vm4, %v1817_v25  ;;  %v2064_v25 = vld [vmem:[#allocation11 + $0x20] sm:$0xff]  ;;  %v2067_v29 = vld [vmem:[#allocation11 + $0x38] sm:$0xff] }
 0x39f   : > { %4536 = vmatpush3.bf16.msra.mxu1 %v4505_v6  ;;  %4152 = vmatprep.mubr.msk.f32.mxu1 %vm5094_vm1, %v5095_v48  ;;  %v4571_v6 = vpack.c.bf16 %v2149_v5, %v2148_v4  ;;  %v4583_v27 = vpack.c.bf16 %v2065_v26, %v2064_v25  ;;  %v2151_v32 = vld [vmem:[#allocation11 + $0x78] sm:$0xff] }
 0x3a0   : > { %4537 = vmatprep.subr.bf16.mxu1 %v5093_v47  ;;  %4554 = vmatpush3.bf16.msra.mxu0 %v4553_v28  ;;  %v2066_v28 = vld [vmem:[#allocation11 + $0x30] sm:$0xff] }
 0x3a1   : > { %4555 = vmatprep.subr.bf16.mxu0 %v5093_v47  ;;  %4197 = vmatprep.mubr.msk.f32.mxu0 %vm5094_vm1, %v5095_v48  ;;  %v4586_v30 = vpack.c.bf16 %v2067_v29, %v2066_v28  ;;  %v2625_v29 = vld [vmem:[%s5766_s20] sm:$0x3] }
 0x3a2   : > { %4153 = vmatmul.mubr.msk.f32.vlgmr.msra.gmra.mrb[12].mxu1 %vm1345_vm4, %v1659_v33  ;;  %v4574_v33 = vpack.c.bf16 %v2151_v32, %v2150_v31  ;;  %v2704_v31 = vld [vmem:[#allocation13] sm:$0xff]  ;;  %v2705_v32 = vld [vmem:[#allocation13 + $0x8] sm:$0xff] }
 0x3a3   : > { %4539 = vmatpush3.bf16.msra.mxu1 %v4538_v34  ;;  %4171 = vmatprep.mubr.msk.f32.mxu1 %vm5094_vm1, %v5095_v48  ;;  %v2374_v34 = vld [vmem:[#allocation11 + $0x80] sm:$0xff] }
 0x3a4   : > { %4540 = vmatprep.subr.bf16.mxu1 %v5093_v47  ;;  %4557 = vmatpush3.bf16.msra.mxu0 %v4556_v37  ;;  %v4589_v36 = vpack.c.bf16 %v2375_v35, %v2374_v34  ;;  %v4625_v34 = vpack.c.bf16 %v2705_v32, %v2704_v31  ;;  %v2706_v35 = vld [vmem:[#allocation13 + $0x10] sm:$0xff]  ;;  %v3437_v31 = vld [vmem:[#allocation14 + $0x68] sm:$0xff] }
 0x3a5   : > { %4558 = vmatprep.subr.bf16.mxu0 %v5093_v47 }
 0x3a7   : > { %4542 = vmatpush3.bf16.msra.mxu1 %v4541_v38  ;;  %v2376_v38 = vld [vmem:[#allocation11 + $0x90] sm:$0xff] }
 0x3a8   : > { %4543 = vmatprep.subr.bf16.mxu1 %v5093_v47  ;;  %4560 = vmatpush3.bf16.msra.mxu0 %v4559_v44  ;;  %v3769_v44 = vld [vmem:[%s5764_s7 + $0x8] sm:$0xf] }
 0x3a9   : > { %4561 = vmatprep.subr.bf16.mxu0 %v5093_v47 }
 0x3ab   : > { %4545 = vmatpush3.bf16.msra.mxu1 %v4544_v41  ;;  %v4592_v41 = vpack.c.bf16 %v2377_v39, %v2376_v38  ;;  %v2708_v38 = vld [vmem:[#allocation13 + $0x20] sm:$0xff]  ;;  %v2709_v39 = vld [vmem:[#allocation13 + $0x28] sm:$0xff] }
 0x3ac   : > { %4546 = vmatprep.subr.bf16.mxu1 %v5093_v47  ;;  %4563 = vmatpush3.bf16.msra.mxu0 %v4562_v52  ;;  %v2379_v52 = vld [vmem:[#allocation11 + $0xa8] sm:$0xff] }
 0x3ad   : > { %4564 = vmatprep.subr.bf16.mxu0 %v5093_v47 }
 0x3af   : > { %4548 = vmatpush3.bf16.msra.mxu1 %v4547_v49  ;;  %v3772_v49 = vld [vmem:[%s5764_s7 + $0xc] sm:$0xf] }
 0x3b0   : > { %4200 = vmatprep.subr.mxu1 %v5095_v48 }
 0x46d   : > { %v1654_v53 = vpop.f32.mrb[4].mxu0 }
 0x46e   : > { %v4147_v54 = vpop.f32.mrb[5].mxu0 }
 0x46f   : > { %v4595_v54 = vpack.c.bf16 %v2379_v52, %v2378_v51 }
 0x471   : > { %v1581_v55 = vpop.f32.mrb[10].mxu1  ;;  %v1887_v56 = vpop.f32.mrb[6].mxu0 }
 0x472   : > { %v1655_v57 = vadd.f32 %v1654_v53, %v1581_v55  ;;  %v4128_v58 = vpop.f32.mrb[11].mxu1  ;;  %v4180_v59 = vpop.f32.mrb[7].mxu0  ;;  %4198 = vmatmul.mubr.msk.f32.vlgmr.msra.gmra.mrb[8].mxu0 %vm1511_vm5, %v1887_v56  ;;  %v2534_v53 = vld [vmem:[#allocation11 + $0xd0] sm:$0xff]  ;;  %v2535_v55 = vld [vmem:[#allocation11 + $0xd8] sm:$0xff] }
 0x473   : > { %4226 = vmatprep.mubr.msk.f32.mxu0 %vm5094_vm1, %v5095_v48  ;;  %4566 = vmatpush3.bf16.msra.mxu0 %v4565_v0  ;;  %v4604_v56 = vpack.c.bf16 %v2535_v55, %v2534_v53  ;;  %v2381_v58 = vld [vmem:[#allocation11 + $0xb8] sm:$0xff]  ;;  %v2536_v59 = vld [vmem:[#allocation11 + $0xe0] sm:$0xff]  ;;  %v3020_v53 = vld [vmem:[#allocation13 + $0x90] sm:$0xff] }
 0x474   : > { %4567 = vmatprep.subr.bf16.mxu0 %v5093_v47  ;;  %v2539_v0 = vld [vmem:[#allocation11 + $0xf8] sm:$0xff] }
 0x475   : > { %v1729_v60 = vpop.f32.mrb[12].mxu1  ;;  %v4610_v1 = vpack.c.bf16 %v2539_v0, %v2538_v63  ;;  %v3022_v0 = vld [vmem:[#allocation13 + $0xa0] sm:$0xff] }
 0x476   : > { %v4154_v61 = vpop.f32.mrb[13].mxu1  ;;  %4172 = vmatmul.mubr.msk.f32.vlgmr.msra.gmra.mrb[14].mxu1 %vm1511_vm5, %v1729_v60 }
 0x477   : > { %4202 = vmatprep.mubr.msk.f32.mxu1 %vm5094_vm1, %v5095_v48  ;;  %4569 = vmatpush3.bf16.msra.mxu0 %v4568_v3  ;;  %v2537_v61 = vld [vmem:[#allocation11 + $0xe8] sm:$0xff] }
 0x478   : > { %4570 = vmatprep.subr.bf16.mxu0 %v5093_v47  ;;  %v4607_v62 = vpack.c.bf16 %v2537_v61, %v2536_v59  ;;  %v3783_v59 = vld [vmem:[%s5766_s20 + $0x4] sm:$0x3]  ;;  %v3177_v61 = vld [vmem:[#allocation13 + $0xc8] sm:$0xff] }
 0x47b   : > { %4572 = vmatpush3.bf16.msra.mxu0 %v4571_v6 }
 0x47c   : > { %4573 = vmatprep.subr.bf16.mxu0 %v5093_v47 }
 0x47f   : > { %4575 = vmatpush3.bf16.msra.mxu0 %v4574_v33  ;;  %v3778_v33 = vld [vmem:[%s5766_s20 + $0x2] sm:$0x3] }
 0x480   : > { %4248 = vmatprep.subr.mxu0 %v5095_v48 }
 0x545   : > { %v1969_v7 = vpop.f32.mrb[8].mxu0 }
 0x546   : > { %v4199_v8 = vpop.f32.mrb[9].mxu0 }
 0x549   : > { %v1811_v9 = vpop.f32.mrb[14].mxu1 }
 0x54a   : > { %v1815_v10 = vadd.f32 %v1811_v9, %v1655_v57  ;;  %v4173_v11 = vpop.f32.mrb[15].mxu1  ;;  %v2380_v57 = vld [vmem:[#allocation11 + $0xb0] sm:$0xff] }
 0x54b   : > { %v4598_v60 = vpack.c.bf16 %v2381_v58, %v2380_v57  ;;  %v2788_v11 = vld [vmem:[#allocation13 + $0x40] sm:$0xff] }
 0x54c   : > { %v1973_v13 = vadd.f32 %v1969_v7, %v1815_v10 }
 0x54e   : > { %v1981_v14 = vadd.f32 %v3763_v12, %v1973_v13  ;;  %v2789_v12 = vld [vmem:[#allocation13 + $0x48] sm:$0xff] }
 0x54f   : > { %v4613_v13 = vpack.c.bf16 %v2789_v12, %v2788_v11  ;;  %v3182_v12 = vld [vmem:[#allocation13 + $0xf0] sm:$0xff] }
 0x550   : > { %v1983_v15 = vmul.f32 0.2, %v1981_v14  ;;  %vm1982_vm6 = vcmp.gt.f32.partialorder %v1981_v14, 0.0 }
 0x552   : > { %v1984_v17 = vsel %vm1982_vm6, %v1981_v14, %v1983_v15  ;;  %v2790_v14 = vld [vmem:[#allocation13 + $0x50] sm:$0xff]  ;;  %v2791_v15 = vld [vmem:[#allocation13 + $0x58] sm:$0xff] }
 0x553   : > { %4201 = vmatpush3.msra.mxu1 %v1984_v17 }
 0x554   : > { %4203 = vmatmul.mubr.msk.f32.vlgmr.msra.gmra.mrb[16].mxu1 %vm1986_vm7, %v1985_v16  ;;  %4205 = vmatprep.subr.mxu1 %v5095_v48  ;;  %v4616_v16 = vpack.c.bf16 %v2791_v15, %v2790_v14 }
 0x555   : > { %4206 = vmatpush3.msra.mxu1 %v1984_v17  ;;  %4207 = vmatprep.mubr.msk.f32.mxu1 %vm5094_vm1, %v5095_v48 }
 0x556   : > { %4576 = vmatprep.subr.bf16.mxu1 %v5093_v47 }
 0x558   : > { %4208 = vmatmul.mubr.msk.f32.vlgmr.msra.gmra.mrb[18].mxu1 %vm1986_vm7, %v3765_v20 }
 0x559   : > { %4578 = vmatpush3.bf16.msra.mxu1 %v4577_v21  ;;  %4245 = vmatprep.mubr.msk.f32.mxu1 %vm5094_vm1, %v5095_v48 }
 0x55a   : > { %4579 = vmatprep.subr.bf16.mxu1 %v5093_v47 }
 0x55d   : > { %4581 = vmatpush3.bf16.msra.mxu1 %v4580_v24  ;;  %v3775_v24 = vld [vmem:[%s5765_s12] ss:$0 sm:$0xff] }
 0x55e   : > { %4582 = vmatprep.subr.bf16.mxu1 %v5093_v47 }
 0x561   : > { %4584 = vmatpush3.bf16.msra.mxu1 %v4583_v27 }
 0x562   : > { %4585 = vmatprep.subr.bf16.mxu1 %v5093_v47 }
 0x565   : > { %4587 = vmatpush3.bf16.msra.mxu1 %v4586_v30 }
 0x566   : > { %4588 = vmatprep.subr.bf16.mxu1 %v5093_v47 }
 0x627   : > { %v2056_v37 = vpop.f32.mrb[16].mxu1 }
 0x628   : > { %v4204_v40 = vpop.f32.mrb[17].mxu1  ;;  %4246 = vmatmul.mubr.msk.f32.vlgmr.msra.gmra.mrb[20].mxu1 %vm1511_vm5, %v2056_v37 }
 0x629   : > { %4590 = vmatpush3.bf16.msra.mxu1 %v4589_v36  ;;  %4269 = vmatprep.mubr.msk.f32.mxu1 %vm5094_vm1, %v5095_v48  ;;  %v2707_v36 = vld [vmem:[#allocation13 + $0x18] sm:$0xff]  ;;  %v4631_v40 = vpack.c.bf16 %v2709_v39, %v2708_v38 }
 0x62a   : > { %4591 = vmatprep.subr.bf16.mxu1 %v5093_v47  ;;  %v4628_v37 = vpack.c.bf16 %v2707_v36, %v2706_v35 }
 0x62b   : > { %v2139_v42 = vpop.f32.mrb[18].mxu1 }
 0x62c   : > { %v4209_v43 = vpop.f32.mrb[19].mxu1  ;;  %4227 = vmatmul.mubr.msk.f32.vlgmr.msra.gmra.mrb[10].mxu0 %vm1511_vm5, %v2139_v42  ;;  %v2711_v42 = vld [vmem:[#allocation13 + $0x38] sm:$0xff] }
 0x62d   : > { %4249 = vmatpush3.msra.mxu0 %v1984_v17  ;;  %4250 = vmatprep.mubr.msk.f32.mxu0 %vm5094_vm1, %v5095_v48 }
 0x62e   : > { %4272 = vmatprep.subr.mxu0 %v5095_v48  ;;  %4593 = vmatpush3.bf16.msra.mxu1 %v4592_v41  ;;  %v2710_v41 = vld [vmem:[#allocation13 + $0x30] sm:$0xff] }
 0x62f   : > { %4594 = vmatprep.subr.bf16.mxu1 %v5093_v47  ;;  %v4634_v43 = vpack.c.bf16 %v2711_v42, %v2710_v41  ;;  %v3269_v42 = vld [vmem:[%s5768_s19] sm:$0x1] }
 0x630   : > { %4251 = vmatmul.mubr.msk.f32.vlgmr.msra.gmra.mrb[12].mxu0 %vm1986_vm7, %v3769_v44  ;;  %v2794_v44 = vld [vmem:[#allocation13 + $0x70] sm:$0xff] }
 0x631   : > { %4273 = vmatpush3.msra.mxu0 %v1984_v17  ;;  %4274 = vmatprep.mubr.msk.f32.mxu0 %vm5094_vm1, %v5095_v48  ;;  %v2792_v17 = vld [vmem:[#allocation13 + $0x60] sm:$0xff]  ;;  %v4622_v46 = vpack.c.bf16 %v2795_v45, %v2794_v44  ;;  %v3349_v45 = vld [vmem:[#allocation14 + $0x8] sm:$0xff] }
 0x632   : > { %4600 = vmatprep.subr.bf16.mxu0 %v5093_v47  ;;  %4596 = vmatpush3.bf16.msra.mxu1 %v4595_v54  ;;  %v4619_v19 = vpack.c.bf16 %v2793_v18, %v2792_v17  ;;  %v3021_v54 = vld [vmem:[#allocation13 + $0x98] sm:$0xff]  ;;  %v3348_v44 = vld [vmem:[#allocation14] sm:$0xff] }
 0x633   : > { %4597 = vmatprep.subr.bf16.mxu1 %v5093_v47 }
 0x634   : > { %4275 = vmatmul.mubr.msk.f32.vlgmr.msra.gmra.mrb[14].mxu0 %vm1986_vm7, %v3772_v49  ;;  %v3018_v49 = vld [vmem:[#allocation13 + $0x80] sm:$0xff] }
 0x635   : > { %4602 = vmatpush3.bf16.msra.mxu0 %v4601_v50  ;;  %4293 = vmatprep.mubr.msk.f32.mxu0 %vm5094_vm1, %v5095_v48  ;;  %v3019_v50 = vld [vmem:[#allocation13 + $0x88] sm:$0xff] }
 0x636   : > { %4603 = vmatprep.subr.bf16.mxu0 %v5093_v47  ;;  %4599 = vmatpush3.bf16.msra.mxu1 %v4598_v60  ;;  %v4637_v51 = vpack.c.bf16 %v3019_v50, %v3018_v49  ;;  %v3176_v60 = vld [vmem:[#allocation13 + $0xc0] sm:$0xff]  ;;  %v4673_v49 = vpack.c.bf16 %v3349_v45, %v3348_v44  ;;  %v3350_v50 = vld [vmem:[#allocation14 + $0x10] sm:$0xff] }
 0x637   : > { %4296 = vmatprep.subr.mxu1 %v5095_v48  ;;  %v4649_v63 = vpack.c.bf16 %v3177_v61, %v3176_v60  ;;  %v3439_v60 = vld [vmem:[#allocation14 + $0x78] sm:$0xff] }
 0x639   : > { %4605 = vmatpush3.bf16.msra.mxu0 %v4604_v56  ;;  %v4640_v56 = vpack.c.bf16 %v3021_v54, %v3020_v53  ;;  %v3352_v53 = vld [vmem:[#allocation14 + $0x20] sm:$0xff]  ;;  %v3353_v54 = vld [vmem:[#allocation14 + $0x28] sm:$0xff] }
 0x63a   : > { %4606 = vmatprep.subr.bf16.mxu0 %v5093_v47 }
 0x63d   : > { %4608 = vmatpush3.bf16.msra.mxu0 %v4607_v62  ;;  %v3787_v62 = vld [vmem:[%s5766_s20 + $0x6] sm:$0x3] }
 0x63e   : > { %4609 = vmatprep.subr.bf16.mxu0 %v5093_v47 }
 0x641   : > { %4611 = vmatpush3.bf16.msra.mxu0 %v4610_v1  ;;  %v3023_v1 = vld [vmem:[#allocation13 + $0xa8] sm:$0xff] }
 0x642   : > { %4612 = vmatprep.subr.bf16.mxu0 %v5093_v47 }
 0x6fb   : > { %v2294_v2 = vpop.f32.mrb[20].mxu1 }
 0x6fc   : > { %v4247_v3 = vpop.f32.mrb[21].mxu1 }
 0x6fd   : > { %v4643_v3 = vpack.c.bf16 %v3023_v1, %v3022_v0 }
 0x6ff   : > { %v2221_v4 = vpop.f32.mrb[10].mxu0 }
 0x700   : > { %v2295_v5 = vadd.f32 %v2294_v2, %v2221_v4  ;;  %v4228_v6 = vpop.f32.mrb[11].mxu0  ;;  %v3178_v2 = vld [vmem:[#allocation13 + $0xd0] sm:$0xff]  ;;  %v3179_v4 = vld [vmem:[#allocation13 + $0xd8] sm:$0xff] }
 0x701   : > { %v3024_v6 = vld [vmem:[#allocation13 + $0xb0] sm:$0xff] }
 0x703   : > { %v2369_v7 = vpop.f32.mrb[12].mxu0 }
 0x704   : > { %v4252_v8 = vpop.f32.mrb[13].mxu0  ;;  %4270 = vmatmul.mubr.msk.f32.vlgmr.msra.gmra.mrb[22].mxu1 %vm1511_vm5, %v2369_v7  ;;  %v3025_v7 = vld [vmem:[#allocation13 + $0xb8] sm:$0xff] }
 0x705   : > { %4298 = vmatprep.mubr.msk.f32.mxu1 %vm5094_vm1, %v5095_v48  ;;  %v3180_v8 = vld [vmem:[#allocation13 + $0xe0] sm:$0xff] }
 0x707   : > { %v2527_v9 = vpop.f32.mrb[14].mxu0 }
 0x708   : > { %v4276_v10 = vpop.f32.mrb[15].mxu0  ;;  %4294 = vmatmul.mubr.msk.f32.vlgmr.msra.gmra.mrb[16].mxu0 %vm1511_vm5, %v2527_v9  ;;  %v4646_v9 = vpack.c.bf16 %v3025_v7, %v3024_v6 }
 0x709   : > { %4322 = vmatprep.mubr.msk.f32.mxu0 %vm5094_vm1, %v5095_v48  ;;  %4614 = vmatpush3.bf16.msra.mxu0 %v4613_v13  ;;  %v3181_v10 = vld [vmem:[#allocation13 + $0xe8] sm:$0xff]  ;;  %v3183_v13 = vld [vmem:[#allocation13 + $0xf8] sm:$0xff] }
 0x70a   : > { %4615 = vmatprep.subr.bf16.mxu0 %v5093_v47  ;;  %v4655_v11 = vpack.c.bf16 %v3181_v10, %v3180_v8  ;;  %v4658_v14 = vpack.c.bf16 %v3183_v13, %v3182_v12 }
 0x70d   : > { %4617 = vmatpush3.bf16.msra.mxu0 %v4616_v16 }
 0x70e   : > { %4618 = vmatprep.subr.bf16.mxu0 %v5093_v47 }
 0x711   : > { %4620 = vmatpush3.bf16.msra.mxu0 %v4619_v19 }
 0x712   : > { %4621 = vmatprep.subr.bf16.mxu0 %v5093_v47 }
 0x715   : > { %4623 = vmatpush3.bf16.msra.mxu0 %v4622_v46  ;;  %v3794_v46 = vld [vmem:[%s5768_s19 + $0x1] sm:$0x1] }
 0x716   : > { %4344 = vmatprep.subr.mxu0 %v5095_v48 }
 0x7d7   : > { %v2451_v20 = vpop.f32.mrb[22].mxu1 }
 0x7d8   : > { %v2455_v21 = vadd.f32 %v2451_v20, %v2295_v5  ;;  %v4271_v22 = vpop.f32.mrb[23].mxu1  ;;  %v4652_v5 = vpack.c.bf16 %v3179_v4, %v3178_v2  ;;  %v3586_v4 = vld [vmem:[#allocation2] sm:$0x1] }
 0x7db   : > { %v2609_v23 = vpop.f32.mrb[16].mxu0 }
 0x7dc   : > { %v2613_v25 = vadd.f32 %v2609_v23, %v2455_v21  ;;  %v4295_v26 = vpop.f32.mrb[17].mxu0 }
 0x7de   : > { %v2621_v27 = vadd.f32 %v3775_v24, %v2613_v25  ;;  %v3432_v24 = vld [vmem:[#allocation14 + $0x40] sm:$0xff]  ;;  %v3433_v25 = vld [vmem:[#allocation14 + $0x48] sm:$0xff] }
 0x7df   : > { %v4661_v26 = vpack.c.bf16 %v3433_v25, %v3432_v24 }
 0x7e0   : > { %vm2622_vm8 = vcmp.gt.f32.partialorder %v2621_v27, 0.0  ;;  %v2623_v28 = vmul.f32 0.2, %v2621_v27 }
 0x7e2   : > { %v2624_v30 = vsel %vm2622_vm8, %v2621_v27, %v2623_v28  ;;  %v3434_v27 = vld [vmem:[#allocation14 + $0x50] sm:$0xff]  ;;  %v3435_v28 = vld [vmem:[#allocation14 + $0x58] sm:$0xff] }
 0x7e3   : > { %4297 = vmatpush3.msk.msra.mxu1 %vm2630_vm9, %v2624_v30 }
 0x7e4   : > { %4299 = vmatmul.mubr.msk.f32.vlgmr.msra.gmra.mrb[24].mxu1 %vm2626_vm10, %v2625_v29  ;;  %4301 = vmatprep.subr.mxu1 %v5095_v48  ;;  %v4664_v29 = vpack.c.bf16 %v3435_v28, %v3434_v27 }
 0x7e5   : > { %4302 = vmatpush3.msk.msra.mxu1 %vm2630_vm9, %v2624_v30  ;;  %4303 = vmatprep.mubr.msk.f32.mxu1 %vm5094_vm1, %v5095_v48 }
 0x7e6   : > { %4624 = vmatprep.subr.bf16.mxu1 %v5093_v47 }
 0x7e8   : > { %4304 = vmatmul.mubr.msk.f32.vlgmr.msra.gmra.mrb[26].mxu1 %vm2626_vm10, %v3778_v33 }
 0x7e9   : > { %4626 = vmatpush3.bf16.msra.mxu1 %v4625_v34  ;;  %4341 = vmatprep.mubr.msk.f32.mxu1 %vm5094_vm1, %v5095_v48 }
 0x7ea   : > { %4627 = vmatprep.subr.bf16.mxu1 %v5093_v47 }
 0x7ed   : > { %4629 = vmatpush3.bf16.msra.mxu1 %v4628_v37  ;;  %v3791_v37 = vld [vmem:[%s5767_s23] ss:$0 sm:$0xff] }
 0x7ee   : > { %4630 = vmatprep.subr.bf16.mxu1 %v5093_v47 }
 0x7f1   : > { %4632 = vmatpush3.bf16.msra.mxu1 %v4631_v40 }
 0x7f2   : > { %4633 = vmatprep.subr.bf16.mxu1 %v5093_v47 }
 0x7f5   : > { %4635 = vmatpush3.bf16.msra.mxu1 %v4634_v43 }
 0x7f6   : > { %4636 = vmatprep.subr.bf16.mxu1 %v5093_v47 }
 0x8b7   : > { %v2700_v52 = vpop.f32.mrb[24].mxu1 }
 0x8b8   : > { %v4300_v55 = vpop.f32.mrb[25].mxu1  ;;  %4342 = vmatmul.mubr.msk.f32.vlgmr.msra.gmra.mrb[28].mxu1 %vm1511_vm5, %v2700_v52 }
 0x8b9   : > { %4638 = vmatpush3.bf16.msra.mxu1 %v4637_v51  ;;  %4365 = vmatprep.mubr.msk.f32.mxu1 %vm5094_vm1, %v5095_v48  ;;  %v3351_v51 = vld [vmem:[#allocation14 + $0x18] sm:$0xff]  ;;  %v4679_v55 = vpack.c.bf16 %v3353_v54, %v3352_v53 }
 0x8ba   : > { %4639 = vmatprep.subr.bf16.mxu1 %v5093_v47  ;;  %v4676_v52 = vpack.c.bf16 %v3351_v51, %v3350_v50 }
 0x8bb   : > { %v2783_v57 = vpop.f32.mrb[26].mxu1 }
 0x8bc   : > { %v4305_v58 = vpop.f32.mrb[27].mxu1  ;;  %4323 = vmatmul.mubr.msk.f32.vlgmr.msra.gmra.mrb[18].mxu0 %vm1511_vm5, %v2783_v57  ;;  %v3355_v57 = vld [vmem:[#allocation14 + $0x38] sm:$0xff] }
 0x8bd   : > { %4345 = vmatpush3.msk.msra.mxu0 %vm2630_vm9, %v2624_v30  ;;  %4346 = vmatprep.mubr.msk.f32.mxu0 %vm5094_vm1, %v5095_v48 }
 0x8be   : > { %4368 = vmatprep.subr.mxu0 %v5095_v48  ;;  %4641 = vmatpush3.bf16.msra.mxu1 %v4640_v56  ;;  %v3354_v56 = vld [vmem:[#allocation14 + $0x30] sm:$0xff] }
 0x8bf   : > { %4642 = vmatprep.subr.bf16.mxu1 %v5093_v47  ;;  %v4682_v58 = vpack.c.bf16 %v3355_v57, %v3354_v56 }
 0x8c0   : > { %4347 = vmatmul.mubr.msk.f32.vlgmr.msra.gmra.mrb[20].mxu0 %vm2626_vm10, %v3783_v59  ;;  %v3438_v59 = vld [vmem:[#allocation14 + $0x70] sm:$0xff] }
 0x8c1   : > { %4369 = vmatpush3.msk.msra.mxu0 %vm2630_vm9, %v2624_v30  ;;  %4370 = vmatprep.mubr.msk.f32.mxu0 %vm5094_vm1, %v5095_v48  ;;  %v3436_v30 = vld [vmem:[#allocation14 + $0x60] sm:$0xff] }
 0x8c2   : > { %4648 = vmatprep.subr.bf16.mxu0 %v5093_v47  ;;  %4644 = vmatpush3.bf16.msra.mxu1 %v4643_v3  ;;  %v4667_v32 = vpack.c.bf16 %v3437_v31, %v3436_v30 }
 0x8c3   : > { %4645 = vmatprep.subr.bf16.mxu1 %v5093_v47 }
 0x8c4   : > { %4371 = vmatmul.mubr.msk.f32.vlgmr.msra.gmra.mrb[22].mxu0 %vm2626_vm10, %v3787_v62 }
 0x8c5   : > { %4650 = vmatpush3.bf16.msra.mxu0 %v4649_v63  ;;  %4389 = vmatprep.mubr.msk.f32.mxu0 %vm5094_vm1, %v5095_v48 }
 0x8c6   : > { %4651 = vmatprep.subr.bf16.mxu0 %v5093_v47  ;;  %4647 = vmatpush3.bf16.msra.mxu1 %v4646_v9 }
 0x8c7   : > { %4392 = vmatprep.subr.mxu1 %v5095_v48 }
 0x8c9   : > { %4653 = vmatpush3.bf16.msra.mxu0 %v4652_v5 }
 0x8ca   : > { %4654 = vmatprep.subr.bf16.mxu0 %v5093_v47 }
 0x8cd   : > { %4656 = vmatpush3.bf16.msra.mxu0 %v4655_v11 }
 0x8ce   : > { %4657 = vmatprep.subr.bf16.mxu0 %v5093_v47 }
 0x8d1   : > { %4659 = vmatpush3.bf16.msra.mxu0 %v4658_v14 }
 0x8d2   : > { %4660 = vmatprep.subr.bf16.mxu0 %v5093_v47 }
 0x98b   : > { %v2938_v15 = vpop.f32.mrb[28].mxu1 }
 0x98c   : > { %v4343_v16 = vpop.f32.mrb[29].mxu1 }
 0x98f   : > { %v2865_v17 = vpop.f32.mrb[18].mxu0 }
 0x990   : > { %v2939_v18 = vadd.f32 %v2938_v15, %v2865_v17  ;;  %v4324_v19 = vpop.f32.mrb[19].mxu0 }
 0x993   : > { %v3013_v20 = vpop.f32.mrb[20].mxu0 }
 0x994   : > { %v4348_v21 = vpop.f32.mrb[21].mxu0  ;;  %4366 = vmatmul.mubr.msk.f32.vlgmr.msra.gmra.mrb[30].mxu1 %vm1511_vm5, %v3013_v20 }
 0x995   : > { %4394 = vmatprep.mubr.msk.f32.mxu1 %vm5094_vm1, %v5095_v48 }
 0x997   : > { %v3171_v22 = vpop.f32.mrb[22].mxu0 }
 0x998   : > { %v4372_v23 = vpop.f32.mrb[23].mxu0  ;;  %4390 = vmatmul.mubr.msk.f32.vlgmr.msra.gmra.mrb[24].mxu0 %vm1511_vm5, %v3171_v22 }
 0x999   : > { %4418 = vmatprep.mubr.msk.f32.mxu0 %vm5094_vm1, %v5095_v48  ;;  %4662 = vmatpush3.bf16.msra.mxu0 %v4661_v26 }
 0x99a   : > { %4663 = vmatprep.subr.bf16.mxu0 %v5093_v47 }
 0x99d   : > { %4665 = vmatpush3.bf16.msra.mxu0 %v4664_v29 }
 0x99e   : > { %4666 = vmatprep.subr.bf16.mxu0 %v5093_v47 }
 0x9a1   : > { %4668 = vmatpush3.bf16.msra.mxu0 %v4667_v32 }
 0x9a2   : > { %4669 = vmatprep.subr.bf16.mxu0 %v5093_v47 }
 0xa67   : > { %v3095_v33 = vpop.f32.mrb[30].mxu1 }
 0xa68   : > { %v3099_v34 = vadd.f32 %v3095_v33, %v2939_v18  ;;  %v4367_v35 = vpop.f32.mrb[31].mxu1 }
 0xa6b   : > { %v3253_v36 = vpop.f32.mrb[24].mxu0 }
 0xa6c   : > { %v3257_v38 = vadd.f32 %v3253_v36, %v3099_v34  ;;  %v4391_v39 = vpop.f32.mrb[25].mxu0 }
 0xa6e   : > { %v3265_v40 = vadd.f32 %v3791_v37, %v3257_v38 }
 0xa70   : > { %vm3266_vm11 = vcmp.gt.f32.partialorder %v3265_v40, 0.0  ;;  %v3267_v41 = vmul.f32 0.2, %v3265_v40 }
 0xa72   : > { %v3268_v43 = vsel %vm3266_vm11, %v3265_v40, %v3267_v41 }
 0xa73   : > { %4393 = vmatpush3.msk.msra.mxu1 %vm3274_vm12, %v3268_v43 }
 0xa74   : > { %4395 = vmatmul.mubr.msk.f32.vlgmr.msra.gmra.mrb[32].mxu1 %vm3270_vm13, %v3269_v42  ;;  %4397 = vmatprep.subr.mxu1 %v5095_v48 }
 0xa75   : > { %4398 = vmatpush3.msk.msra.mxu1 %vm3274_vm12, %v3268_v43  ;;  %4399 = vmatprep.mubr.msk.f32.mxu1 %vm5094_vm1, %v5095_v48 }
 0xa76   : > { %4672 = vmatprep.subr.bf16.mxu1 %v5093_v47 }
 0xa78   : > { %4400 = vmatmul.mubr.msk.f32.vlgmr.msra.gmra.mrb[34].mxu1 %vm3270_vm13, %v3794_v46 }
 0xa79   : > { %4674 = vmatpush3.bf16.msra.mxu1 %v4673_v49  ;;  %4437 = vmatprep.mubr.msk.f32.mxu1 %vm5094_vm1, %v5095_v48  ;;  %v4670_v48 = vpack.c.bf16 %v3439_v60, %v3438_v59 }
 0xa7a   : > { %4675 = vmatprep.subr.bf16.mxu1 %v5093_v47 }
 0xa7b   : > { %4671 = vmatpush3.bf16.msra.mxu0 %v4670_v48 }
 0xa7d   : > { %4677 = vmatpush3.bf16.msra.mxu1 %v4676_v52 }
 0xa7e   : > { %4678 = vmatprep.subr.bf16.mxu1 %v5093_v47 }
 0xa81   : > { %4680 = vmatpush3.bf16.msra.mxu1 %v4679_v55 }
 0xa82   : > { %4681 = vmatprep.subr.bf16.mxu1 %v5093_v47 }
 0xa85   : > { %4683 = vmatpush3.bf16.msra.mxu1 %v4682_v58 }
 0xb47   : > { %v3344_v61 = vpop.f32.mrb[32].mxu1 }
 0xb48   : > { %v4396_v62 = vpop.f32.mrb[33].mxu1  ;;  %4438 = vmatmul.mubr.msk.f32.vlgmr.msra.gmra.mrb[36].mxu1 %vm1511_vm5, %v3344_v61 }
 0xb4b   : > { %v3427_v63 = vpop.f32.mrb[34].mxu1 }
 0xb4c   : > { %4419 = vmatmul.mubr.msk.f32.vlgmr.msra.gmra.mrb[26].mxu0 %vm1511_vm5, %v3427_v63  ;;  %v4401_v0 = vpop.f32.mrb[35].mxu1 }
 0xc1b   : > { %v3582_v1 = vpop.f32.mrb[36].mxu1 }
 0xc1c   : > { %v4439_v2 = vpop.f32.mrb[37].mxu1 }
 0xc1f   : > { %v3509_v3 = vpop.f32.mrb[26].mxu0 }
 0xc20   : > { %v3583_v47 = vadd.f32 %v3582_v1, %v3509_v3  ;;  %v4420_v5 = vpop.f32.mrb[27].mxu0 }
 0xc22   : > { %v3587_v6 = vadd.f32 %v3586_v4, %v3583_v47 }
 0xc24   : > { %3589 = vst.msk [vmem:[%s641_s27] sm:$0x1] %vm3588_vm14, %v3587_v6 }
 0xc25 PF: > { %p32_p10 = scmp.ge.s32.totalorder %s5397_s17, 4   ;;  %s5770_s23 = smov %s5073_s24 }
 0xc26   : > { %s5771_s24 = smov %s5077_s25  ;;  %s5772_s25 = smov %s5408_s1 }
 0xc27   : > { %s5773_s26 = smov %s5397_s17  ;;  %34 = sbr.rel (!%p32_p10) target bundleno = 16 (0x10), region = 178 }
 0xc2e   :  { %3607 = vsyncpa [#allocation4], 1 }
 0xc2f   :  { %3609 = vsyncpa [#allocation4 + $0x1], 1 }
 0xc30   :  { %3610 = vsyncpa [#allocation6], 1 }
 0xc31   :  { %3611 = vsyncpa [#allocation9], 1 }
 0xc32   :  { %3612 = vsyncpa [#allocation12], 1 }
 0xc33   :  { %3613 = vsyncpa [#allocation15], 1 }

</bundles_post_ra>
